<compile_context>
chip_gen: v7x
topology: tpu7x:2x2x1
jax: 0.10.0
libtpu: 0.0.40
codegen_flags: <defaults>
</compile_context>

<pallas_src>
import numpy as np
import jax
import jax.numpy as jnp
from jax import lax
from jax.experimental import pallas as pl
from jax.experimental.pallas import tpu as pltpu

# transpose-conv tap table: output parity -> ((kernel_index, input_shift), ...)
# derived from  oh = 2*ih - 1 + kh   (stride=2, padding=1, kernel=4)
_TAPS = {0: ((1, 0), (3, -1)), 1: ((0, 1), (2, 0))}


def _make_kernel(H, W, has_skip):
    HW = H * W

    def kernel(*refs):
        if has_skip:
            x_ref, skip_ref, w1_ref, w2_ref, w3_ref, sbm_ref, sbo_ref, o_ref = refs
        else:
            x_ref, w1_ref, w2_ref, w3_ref, sbm_ref, sbo_ref, o_ref = refs
            skip_ref = None

        sbm = sbm_ref[...]                       # (Cmid, 4) f32: s1, b1, s2, b2'
        sbo = sbo_ref[...]                       # (Cout, 2) f32: s3, b3

        # ---------- stage 1: 1x1 conv (bf16 MXU, f32 acc) + BN1 + ReLU ----------
        h = jnp.dot(w1_ref[...], x_ref[0], preferred_element_type=jnp.float32)
        h = jnp.maximum(h * sbm[:, 0:1] + sbm[:, 1:2], 0.0)      # (Cmid, HW) f32
        # One downcast; all shifted copies / selects below stay bf16 (v6e/v7x bf16
        # VALU halves their vreg/VMEM footprint).  On v5e keep this block in f32.
        h16 = h.astype(jnp.bfloat16)

        # ---------- boundary masks, built once (hoisted out of the shift loop) ----
        lane = lax.broadcasted_iota(jnp.int32, (1, HW), 1)       # flat spatial idx
        col = lane % W
        row_mask = {-1: lane >= W, 0: None, 1: lane < (H - 1) * W}
        col_mask = {-1: col >= 1, 0: None, 1: col < (W - 1)}

        # shifted[(dh,dw)][c, i*W+j] = h[c, (i+dh)*W + (j+dw)]  (zero off-image).
        # jnp.roll with a static shift lowers to lane slices + concat (lane shifts);
        # it handles negative shifts and also runs under TPU interpret mode.
        # TODO(synk): switch to pltpu.roll(h16, (-(dh*W+dw)) % HW, axis=1) (XLU vrot)
        #             if the slice/concat relayouts ever show up in the bundle dump.
        def make_shift(dh, dw):
            if dh == 0 and dw == 0:
                return h16
            r = jnp.roll(h16, -(dh * W + dw), axis=1)
            m, mc = row_mask[dh], col_mask[dw]
            m = mc if m is None else (m if mc is None else m & mc)
            return jnp.where(m, r, jnp.zeros_like(r))

        shifted = {(dh, dw): make_shift(dh, dw)
                   for dh in (-1, 0, 1) for dw in (-1, 0, 1)}

        # ---------- per output parity p = 2*pr + ps:
        #   ConvT(k4,s2,p1) taps -> BN2+ReLU -> 1x1 conv -> BN3+ReLU -> (+skip) ----
        # Everything stays in registers; no (Cmid, 4*HW) f32 scratch round-trip.
        for pr in (0, 1):
            for ps in (0, 1):
                p = 2 * pr + ps
                acc = None
                # TODO(synk): for Cmid >= 128 on v6e/v7x, K-stack these 4 taps into a
                #             single (Cmid, 4*Cmid) @ (4*Cmid, HW) matmul to fill the
                #             256-deep MXU contraction dim.
                for kh, dh in _TAPS[pr]:
                    for kw, dw in _TAPS[ps]:
                        d = jnp.dot(w2_ref[kh * 4 + kw], shifted[dh, dw],
                                    preferred_element_type=jnp.float32)
                        acc = d if acc is None else acc + d
                y16 = jnp.maximum(acc * sbm[:, 2:3] + sbm[:, 3:4],
                                  0.0).astype(jnp.bfloat16)       # (Cmid, HW)
                z = jnp.dot(w3_ref[...], y16, preferred_element_type=jnp.float32)
                z = jnp.maximum(z * sbo[:, 0:1] + sbo[:, 1:2], 0.0)  # (Cout, HW) f32
                if has_skip:
                    z = z + skip_ref[0, p].astype(jnp.float32)
                o_ref[0, p] = z

    return kernel


def decoder_block_pallas(x_nchw, skip_nchw, kp):
    """x_nchw: (N, Cin, H, W); skip_nchw: (N, Cout, 2H, 2W) or None. Returns NCHW f32."""
    N, Cin, H, W = x_nchw.shape
    HW = H * W
    w1, w2, w3 = kp["w1"], kp["w2"], kp["w3"]
    sbm, sbo = kp["sb_mid"], kp["sb_out"]
    Cmid, Cout = w1.shape[0], w3.shape[0]
    has_skip = skip_nchw is not None

    # channel-first working layout: (N, C, H*W) -- pure reshape; bf16 halves x DMA.
    x = x_nchw.astype(jnp.bfloat16).reshape(N, Cin, HW)

    inputs = [x]
    in_specs = [pl.BlockSpec((1, Cin, HW), lambda n: (n, 0, 0))]
    if has_skip:
        # parity split: skip_p[n, 2r+s, c, i*W+j] = skip[n, c, 2i+r, 2j+s]  (bf16 halves
        # both the XLA transpose bytes and the HBM->VMEM DMA; upcast in-kernel for +).
        skip_p = (skip_nchw.astype(jnp.bfloat16)
                  .reshape(N, Cout, H, 2, W, 2)
                  .transpose(0, 3, 5, 1, 2, 4)
                  .reshape(N, 4, Cout, HW))
        inputs.append(skip_p)
        in_specs.append(pl.BlockSpec((1, 4, Cout, HW), lambda n: (n, 0, 0, 0)))
    inputs += [w1, w2, w3, sbm, sbo]
    in_specs += [
        pl.BlockSpec(w1.shape, lambda n: (0, 0)),      # (Cmid, Cin)      bf16, resident
        pl.BlockSpec(w2.shape, lambda n: (0, 0, 0)),   # (16, Cmid, Cmid) bf16, resident
        pl.BlockSpec(w3.shape, lambda n: (0, 0)),      # (Cout, Cmid)     bf16, resident
        pl.BlockSpec(sbm.shape, lambda n: (0, 0)),     # (Cmid, 4)        f32
        pl.BlockSpec(sbo.shape, lambda n: (0, 0)),     # (Cout, 2)        f32
    ]

    # VMEM budget: double-buffered I/O blocks + resident weights + temporaries, with
    # margin; capped at 64 MiB so it stays legal on v7x (128 MiB on v5e/v6e).
    io_b = Cin * HW * 2 + 4 * Cout * HW * 4 + (4 * Cout * HW * 2 if has_skip else 0)
    w_b = (Cmid * Cin + 16 * Cmid * Cmid + Cout * Cmid) * 2 + (4 * Cmid + 2 * Cout) * 4
    tmp_b = Cmid * HW * 4 + 10 * Cmid * HW * 2 + (Cmid + Cout) * HW * 4
    vmem_limit = int(min(64 << 20,
                         max(2 * (io_b + w_b) + 2 * tmp_b + (8 << 20), 16 << 20)))

    out_p = pl.pallas_call(
        _make_kernel(H, W, has_skip),
        out_shape=jax.ShapeDtypeStruct((N, 4, Cout, HW), jnp.float32),
        grid_spec=pltpu.PrefetchScalarGridSpec(
            num_scalar_prefetch=0,
            grid=(N,),
            in_specs=in_specs,
            out_specs=pl.BlockSpec((1, 4, Cout, HW), lambda n: (n, 0, 0, 0)),
        ),
        compiler_params=pltpu.CompilerParams(
            dimension_semantics=("parallel",),
            vmem_limit_bytes=vmem_limit),
    )(*inputs)

    # re-interleave parities: (N, 4, Cout, H*W) -> (N, Cout, 2H, 2W).
    # TODO(synk): fold the column interleave into the kernel (strided sublane stores)
    #             to drop this extra full HBM read+write for production shapes.
    out = (out_p.reshape(N, 2, 2, Cout, H, W)
           .transpose(0, 3, 4, 1, 5, 2)
           .reshape(N, Cout, 2 * H, 2 * W))
    return out


# ------------------------- parameter construction -------------------------
def make_params(key, in_channels, out_channels, eps=1e-5):
    Cmid = in_channels // 4
    ks = jax.random.split(key, 16)
    nrm = lambda k, shp: 0.1 * jax.random.normal(k, shp, jnp.float32)

    # PyTorch-layout weights
    W1 = nrm(ks[0], (Cmid, in_channels, 1, 1))     # Conv2d OIHW, bias=False (BN follows)
    W2 = nrm(ks[1], (Cmid, Cmid, 4, 4))            # ConvTranspose2d (in, out, kh, kw)
    b2_conv = nrm(ks[2], (Cmid,))                  # ConvTranspose2d bias (default True)
    W3 = nrm(ks[3], (out_channels, Cmid, 1, 1))    # Conv2d OIHW, bias=False

    def bn(k1, k2, k3, k4, c):  # inference-mode BN folded to scale/bias
        gamma = 1.0 + 0.1 * jax.random.normal(k1, (c,), jnp.float32)
        beta = 0.1 * jax.random.normal(k2, (c,), jnp.float32)
        mean = 0.1 * jax.random.normal(k3, (c,), jnp.float32)
        var = jnp.abs(jax.random.normal(k4, (c,), jnp.float32)) + 0.5
        scale = gamma / jnp.sqrt(var + eps)
        return scale, beta - mean * scale

    s1, b1 = bn(ks[4], ks[5], ks[6], ks[7], Cmid)
    s2, b2 = bn(ks[8], ks[9], ks[10], ks[11], Cmid)
    s3, b3 = bn(ks[12], ks[13], ks[14], ks[15], out_channels)

    torch_params = dict(W1=W1, W2=W2, b2_conv=b2_conv, W3=W3,
                        s1=s1, b1=b1, s2=s2, b2=b2, s3=s3, b3=b3)

    # kernel-format params: channel-first (out, in) matmul weights in bf16,
    # BN scale/bias packed column-wise, conv-T bias folded into BN2 bias.
    kernel_params = dict(
        w1=W1[:, :, 0, 0].astype(jnp.bfloat16),                              # (Cmid, Cin)
        w2=W2.transpose(2, 3, 1, 0).reshape(16, Cmid, Cmid).astype(jnp.bfloat16),
        w3=W3[:, :, 0, 0].astype(jnp.bfloat16),                              # (Cout, Cmid)
        sb_mid=jnp.stack([s1, b1, s2, b2 + s2 * b2_conv], axis=1),           # (Cmid, 4)
        sb_out=jnp.stack([s3, b3], axis=1),                                  # (Cout, 2)
    )
    return torch_params, kernel_params


# ------------------------- pure-JAX reference (NCHW, f32) -------------------------
def reference(x, skip, p):
    dn = ("NCHW", "OIHW", "NCHW")
    hp = lax.Precision.HIGHEST
    bn = lambda t, s, b: t * s[None, :, None, None] + b[None, :, None, None]
    h = lax.conv_general_dilated(x, p["W1"], (1, 1), "VALID",
                                 dimension_numbers=dn, precision=hp)
    h = jax.nn.relu(bn(h, p["s1"], p["b1"]))
    wt = jnp.flip(p["W2"], (2, 3)).transpose(1, 0, 2, 3)       # ConvT == dilated conv w/ rot180
    y = lax.conv_general_dilated(h, wt, (1, 1), ((2, 2), (2, 2)),
                                 lhs_dilation=(2, 2), dimension_numbers=dn, precision=hp)
    y = y + p["b2_conv"][None, :, None, None]
    y = jax.nn.relu(bn(y, p["s2"], p["b2"]))
    z = lax.conv_general_dilated(y, p["W3"], (1, 1), "VALID",
                                 dimension_numbers=dn, precision=hp)
    z = jax.nn.relu(bn(z, p["s3"], p["b3"]))
    return z + skip if skip is not None else z


if __name__ == "__main__":
    N, Cin, H, W = 2, 64, 16, 16
    Cout = 32

    key = jax.random.PRNGKey(0)
    kx, ksk, kp = jax.random.split(key, 3)
    x = jax.random.normal(kx, (N, Cin, H, W), jnp.float32)            # NCHW, like PyTorch
    skip = jax.random.normal(ksk, (N, Cout, 2 * H, 2 * W), jnp.float32)

    torch_params, kernel_params = make_params(kp, Cin, Cout)

    # with skip
    out = jax.block_until_ready(decoder_block_pallas(x, skip, kernel_params))
    ref = jax.block_until_ready(reference(x, skip, torch_params))
    assert out.shape == (N, Cout, 2 * H, 2 * W), out.shape
    o_np, r_np = np.asarray(out), np.asarray(ref)
    if not np.allclose(o_np, r_np, rtol=2e-2, atol=2e-2):   # bf16 MXU / bf16-I/O tolerance
        raise AssertionError(
            f"Pallas kernel (skip) does not match reference (max|diff|="
            f"{float(np.max(np.abs(o_np - r_np)))})")

    # without skip (dedicated kernel variant, no zero tensor DMA'd)
    out_ns = jax.block_until_ready(decoder_block_pallas(x, None, kernel_params))
    ref_ns = jax.block_until_ready(reference(x, None, torch_params))
    o_np, r_np = np.asarray(out_ns), np.asarray(ref_ns)
    if not np.allclose(o_np, r_np, rtol=2e-2, atol=2e-2):
        raise AssertionError(
            f"Pallas kernel (no skip) does not match reference (max|diff|="
            f"{float(np.max(np.abs(o_np - r_np)))})")

    print("KERNEL_OK")
</pallas_src>

<mosaic_0001>
module attributes {stable_mosaic.version = 11 : i64} {
  func.func @kernel(%arg0: i32, %arg1: memref<1x64x256xbf16, #tpu.memory_space<vmem>>, %arg2: memref<1x4x32x256xbf16, #tpu.memory_space<vmem>>, %arg3: memref<16x64xbf16, #tpu.memory_space<vmem>>, %arg4: memref<16x16x16xbf16, #tpu.memory_space<vmem>>, %arg5: memref<32x16xbf16, #tpu.memory_space<vmem>>, %arg6: memref<16x4xf32, #tpu.memory_space<vmem>>, %arg7: memref<32x2xf32, #tpu.memory_space<vmem>>, %arg8: memref<1x4x32x256xf32, #tpu.memory_space<vmem>>) attributes {dimension_semantics = [#tpu.dimension_semantics<parallel>], iteration_bounds = array<i64: 2>, scalar_prefetch = 0 : i64, scratch_operands = 0 : i64, tpu.core_type = #tpu.core_type<tc>, window_params = [{transform_indices = @transform_0, window_bounds = array<i64: 1, 64, 256>}, {transform_indices = @transform_1, window_bounds = array<i64: 1, 4, 32, 256>}, {pipeline_mode = #tpu.pipeline_mode<synchronous>, transform_indices = @transform_2, window_bounds = array<i64: 16, 64>}, {pipeline_mode = #tpu.pipeline_mode<synchronous>, transform_indices = @transform_3, window_bounds = array<i64: 16, 16, 16>}, {pipeline_mode = #tpu.pipeline_mode<synchronous>, transform_indices = @transform_4, window_bounds = array<i64: 32, 16>}, {pipeline_mode = #tpu.pipeline_mode<synchronous>, transform_indices = @transform_5, window_bounds = array<i64: 16, 4>}, {pipeline_mode = #tpu.pipeline_mode<synchronous>, transform_indices = @transform_6, window_bounds = array<i64: 32, 2>}, {transform_indices = @transform_7, window_bounds = array<i64: 1, 4, 32, 256>}]} {
    %c0 = arith.constant 0 : index
    %c0_0 = arith.constant 0 : index
    %0 = vector.load %arg6[%c0, %c0_0] : memref<16x4xf32, #tpu.memory_space<vmem>>, vector<16x4xf32>
    %c0_1 = arith.constant 0 : index
    %c0_2 = arith.constant 0 : index
    %1 = vector.load %arg7[%c0_1, %c0_2] : memref<32x2xf32, #tpu.memory_space<vmem>>, vector<32x2xf32>
    %c0_3 = arith.constant 0 : index
    %c0_4 = arith.constant 0 : index
    %2 = vector.load %arg3[%c0_3, %c0_4] : memref<16x64xbf16, #tpu.memory_space<vmem>>, vector<16x64xbf16>
    %c0_5 = arith.constant 0 : index
    %c0_6 = arith.constant 0 : index
    %c0_7 = arith.constant 0 : index
    %3 = vector.load %arg1[%c0_5, %c0_6, %c0_7] : memref<1x64x256xbf16, #tpu.memory_space<vmem>>, vector<1x64x256xbf16>
    %4 = vector.shape_cast %3 : vector<1x64x256xbf16> to vector<64x256xbf16>
    %cst = arith.constant dense<0.000000e+00> : vector<16x256xf32>
    %5 = tpu.matmul %2, %4, %cst {dimension_numbers = #tpu.dot_dimension_numbers<[1], [0], [0], [1], [0, 0, 1, 1], [], []>} : vector<16x64xbf16>, vector<64x256xbf16>, vector<16x256xf32> -> vector<16x256xf32>
    %6 = vector.extract_strided_slice %0 {offsets = [0, 0], sizes = [16, 1], strides = [1, 1]} : vector<16x4xf32> to vector<16x1xf32>
    %7 = vector.broadcast %6 : vector<16x1xf32> to vector<16x256xf32>
    %8 = arith.mulf %5, %7 : vector<16x256xf32>
    %9 = vector.extract_strided_slice %0 {offsets = [0, 1], sizes = [16, 1], strides = [1, 1]} : vector<16x4xf32> to vector<16x1xf32>
    %10 = vector.broadcast %9 : vector<16x1xf32> to vector<16x256xf32>
    %11 = arith.addf %8, %10 : vector<16x256xf32>
    %cst_8 = arith.constant 0.000000e+00 : f32
    %12 = vector.broadcast %cst_8 : f32 to vector<16x256xf32>
    %13 = arith.maximumf %11, %12 : vector<16x256xf32>
    %14 = arith.truncf %13 : vector<16x256xf32> to vector<16x256xbf16>
    %15 = tpu.iota {dimensions = array<i32: 1>} : vector<1x256xi32>
    %c16_i32 = arith.constant 16 : i32
    %c0_i32 = arith.constant 0 : i32
    %16 = arith.cmpi eq, %c16_i32, %c0_i32 : i32
    %c1_i32 = arith.constant 1 : i32
    %17 = arith.select %16, %c1_i32, %c16_i32 : i32
    %18 = vector.broadcast %17 : i32 to vector<1x256xi32>
    %19 = arith.remsi %15, %18 : vector<1x256xi32>
    %c0_i32_9 = arith.constant 0 : i32
    %20 = vector.broadcast %c0_i32_9 : i32 to vector<1x256xi32>
    %21 = arith.cmpi ne, %19, %20 : vector<1x256xi32>
    %c0_i32_10 = arith.constant 0 : i32
    %22 = vector.broadcast %c0_i32_10 : i32 to vector<1x256xi32>
    %23 = arith.cmpi slt, %19, %22 : vector<1x256xi32>
    %c0_i32_11 = arith.constant 0 : i32
    %24 = arith.cmpi slt, %17, %c0_i32_11 : i32
    %25 = vector.broadcast %24 : i1 to vector<1x256xi1>
    %26 = vector.broadcast %25 : vector<1x256xi1> to vector<1x256xi1>
    %27 = arith.xori %23, %26 : vector<1x256xi1>
    %28 = arith.andi %27, %21 : vector<1x256xi1>
    %29 = vector.broadcast %17 : i32 to vector<1x256xi32>
    %30 = arith.addi %19, %29 : vector<1x256xi32>
    %31 = arith.select %28, %30, %19 : vector<1x256xi1>, vector<1x256xi32>
    %c16_i32_12 = arith.constant 16 : i32
    %32 = vector.broadcast %c16_i32_12 : i32 to vector<1x256xi32>
    %33 = arith.cmpi sge, %15, %32 : vector<1x256xi32>
    %c240_i32 = arith.constant 240 : i32
    %34 = vector.broadcast %c240_i32 : i32 to vector<1x256xi32>
    %35 = arith.cmpi slt, %15, %34 : vector<1x256xi32>
    %c1_i32_13 = arith.constant 1 : i32
    %36 = vector.broadcast %c1_i32_13 : i32 to vector<1x256xi32>
    %37 = arith.cmpi sge, %31, %36 : vector<1x256xi32>
    %c15_i32 = arith.constant 15 : i32
    %38 = vector.broadcast %c15_i32 : i32 to vector<1x256xi32>
    %39 = arith.cmpi slt, %31, %38 : vector<1x256xi32>
    %40 = vector.extract_strided_slice %14 {offsets = [0, 239], sizes = [16, 17], strides = [1, 1]} : vector<16x256xbf16> to vector<16x17xbf16>
    %41 = vector.extract_strided_slice %14 {offsets = [0, 0], sizes = [16, 239], strides = [1, 1]} : vector<16x256xbf16> to vector<16x239xbf16>
    %42 = tpu.concatenate %40, %41 in 1 : vector<16x17xbf16>, vector<16x239xbf16> -> vector<16x256xbf16>
    %43 = arith.andi %33, %37 : vector<1x256xi1>
    %cst_14 = arith.constant 0.000000e+00 : bf16
    %44 = vector.broadcast %cst_14 : bf16 to vector<16x256xbf16>
    %45 = vector.shape_cast %43 : vector<1x256xi1> to vector<1x256xi1>
    %46 = vector.broadcast %45 : vector<1x256xi1> to vector<16x256xi1>
    %47 = arith.select %46, %42, %44 : vector<16x256xi1>, vector<16x256xbf16>
    %48 = vector.extract_strided_slice %14 {offsets = [0, 240], sizes = [16, 16], strides = [1, 1]} : vector<16x256xbf16> to vector<16x16xbf16>
    %49 = vector.extract_strided_slice %14 {offsets = [0, 0], sizes = [16, 240], strides = [1, 1]} : vector<16x256xbf16> to vector<16x240xbf16>
    %50 = tpu.concatenate %48, %49 in 1 : vector<16x16xbf16>, vector<16x240xbf16> -> vector<16x256xbf16>
    %cst_15 = arith.constant 0.000000e+00 : bf16
    %51 = vector.broadcast %cst_15 : bf16 to vector<16x256xbf16>
    %52 = vector.shape_cast %33 : vector<1x256xi1> to vector<1x256xi1>
    %53 = vector.broadcast %52 : vector<1x256xi1> to vector<16x256xi1>
    %54 = arith.select %53, %50, %51 : vector<16x256xi1>, vector<16x256xbf16>
    %55 = vector.extract_strided_slice %14 {offsets = [0, 241], sizes = [16, 15], strides = [1, 1]} : vector<16x256xbf16> to vector<16x15xbf16>
    %56 = vector.extract_strided_slice %14 {offsets = [0, 0], sizes = [16, 241], strides = [1, 1]} : vector<16x256xbf16> to vector<16x241xbf16>
    %57 = tpu.concatenate %55, %56 in 1 : vector<16x15xbf16>, vector<16x241xbf16> -> vector<16x256xbf16>
    %58 = arith.andi %33, %39 : vector<1x256xi1>
    %cst_16 = arith.constant 0.000000e+00 : bf16
    %59 = vector.broadcast %cst_16 : bf16 to vector<16x256xbf16>
    %60 = vector.shape_cast %58 : vector<1x256xi1> to vector<1x256xi1>
    %61 = vector.broadcast %60 : vector<1x256xi1> to vector<16x256xi1>
    %62 = arith.select %61, %57, %59 : vector<16x256xi1>, vector<16x256xbf16>
    %63 = vector.extract_strided_slice %14 {offsets = [0, 255], sizes = [16, 1], strides = [1, 1]} : vector<16x256xbf16> to vector<16x1xbf16>
    %64 = vector.extract_strided_slice %14 {offsets = [0, 0], sizes = [16, 255], strides = [1, 1]} : vector<16x256xbf16> to vector<16x255xbf16>
    %65 = tpu.concatenate %63, %64 in 1 : vector<16x1xbf16>, vector<16x255xbf16> -> vector<16x256xbf16>
    %cst_17 = arith.constant 0.000000e+00 : bf16
    %66 = vector.broadcast %cst_17 : bf16 to vector<16x256xbf16>
    %67 = vector.shape_cast %37 : vector<1x256xi1> to vector<1x256xi1>
    %68 = vector.broadcast %67 : vector<1x256xi1> to vector<16x256xi1>
    %69 = arith.select %68, %65, %66 : vector<16x256xi1>, vector<16x256xbf16>
    %70 = vector.extract_strided_slice %14 {offsets = [0, 1], sizes = [16, 255], strides = [1, 1]} : vector<16x256xbf16> to vector<16x255xbf16>
    %71 = vector.extract_strided_slice %14 {offsets = [0, 0], sizes = [16, 1], strides = [1, 1]} : vector<16x256xbf16> to vector<16x1xbf16>
    %72 = tpu.concatenate %70, %71 in 1 : vector<16x255xbf16>, vector<16x1xbf16> -> vector<16x256xbf16>
    %cst_18 = arith.constant 0.000000e+00 : bf16
    %73 = vector.broadcast %cst_18 : bf16 to vector<16x256xbf16>
    %74 = vector.shape_cast %39 : vector<1x256xi1> to vector<1x256xi1>
    %75 = vector.broadcast %74 : vector<1x256xi1> to vector<16x256xi1>
    %76 = arith.select %75, %72, %73 : vector<16x256xi1>, vector<16x256xbf16>
    %77 = vector.extract_strided_slice %14 {offsets = [0, 15], sizes = [16, 241], strides = [1, 1]} : vector<16x256xbf16> to vector<16x241xbf16>
    %78 = vector.extract_strided_slice %14 {offsets = [0, 0], sizes = [16, 15], strides = [1, 1]} : vector<16x256xbf16> to vector<16x15xbf16>
    %79 = tpu.concatenate %77, %78 in 1 : vector<16x241xbf16>, vector<16x15xbf16> -> vector<16x256xbf16>
    %80 = arith.andi %35, %37 : vector<1x256xi1>
    %cst_19 = arith.constant 0.000000e+00 : bf16
    %81 = vector.broadcast %cst_19 : bf16 to vector<16x256xbf16>
    %82 = vector.shape_cast %80 : vector<1x256xi1> to vector<1x256xi1>
    %83 = vector.broadcast %82 : vector<1x256xi1> to vector<16x256xi1>
    %84 = arith.select %83, %79, %81 : vector<16x256xi1>, vector<16x256xbf16>
    %85 = vector.extract_strided_slice %14 {offsets = [0, 16], sizes = [16, 240], strides = [1, 1]} : vector<16x256xbf16> to vector<16x240xbf16>
    %86 = vector.extract_strided_slice %14 {offsets = [0, 0], sizes = [16, 16], strides = [1, 1]} : vector<16x256xbf16> to vector<16x16xbf16>
    %87 = tpu.concatenate %85, %86 in 1 : vector<16x240xbf16>, vector<16x16xbf16> -> vector<16x256xbf16>
    %cst_20 = arith.constant 0.000000e+00 : bf16
    %88 = vector.broadcast %cst_20 : bf16 to vector<16x256xbf16>
    %89 = vector.shape_cast %35 : vector<1x256xi1> to vector<1x256xi1>
    %90 = vector.broadcast %89 : vector<1x256xi1> to vector<16x256xi1>
    %91 = arith.select %90, %87, %88 : vector<16x256xi1>, vector<16x256xbf16>
    %92 = vector.extract_strided_slice %14 {offsets = [0, 17], sizes = [16, 239], strides = [1, 1]} : vector<16x256xbf16> to vector<16x239xbf16>
    %93 = vector.extract_strided_slice %14 {offsets = [0, 0], sizes = [16, 17], strides = [1, 1]} : vector<16x256xbf16> to vector<16x17xbf16>
    %94 = tpu.concatenate %92, %93 in 1 : vector<16x239xbf16>, vector<16x17xbf16> -> vector<16x256xbf16>
    %95 = arith.andi %35, %39 : vector<1x256xi1>
    %cst_21 = arith.constant 0.000000e+00 : bf16
    %96 = vector.broadcast %cst_21 : bf16 to vector<16x256xbf16>
    %97 = vector.shape_cast %95 : vector<1x256xi1> to vector<1x256xi1>
    %98 = vector.broadcast %97 : vector<1x256xi1> to vector<16x256xi1>
    %99 = arith.select %98, %94, %96 : vector<16x256xi1>, vector<16x256xbf16>
    %c5 = arith.constant 5 : index
    %c0_22 = arith.constant 0 : index
    %c0_23 = arith.constant 0 : index
    %100 = vector.load %arg4[%c5, %c0_22, %c0_23] : memref<16x16x16xbf16, #tpu.memory_space<vmem>>, vector<1x16x16xbf16>
    %101 = vector.shape_cast %100 : vector<1x16x16xbf16> to vector<16x16xbf16>
    %cst_24 = arith.constant dense<0.000000e+00> : vector<16x256xf32>
    %102 = tpu.matmul %101, %14, %cst_24 {dimension_numbers = #tpu.dot_dimension_numbers<[1], [0], [0], [1], [0, 0, 1, 1], [], []>} : vector<16x16xbf16>, vector<16x256xbf16>, vector<16x256xf32> -> vector<16x256xf32>
    %c7 = arith.constant 7 : index
    %c0_25 = arith.constant 0 : index
    %c0_26 = arith.constant 0 : index
    %103 = vector.load %arg4[%c7, %c0_25, %c0_26] : memref<16x16x16xbf16, #tpu.memory_space<vmem>>, vector<1x16x16xbf16>
    %104 = vector.shape_cast %103 : vector<1x16x16xbf16> to vector<16x16xbf16>
    %cst_27 = arith.constant dense<0.000000e+00> : vector<16x256xf32>
    %105 = tpu.matmul %104, %69, %cst_27 {dimension_numbers = #tpu.dot_dimension_numbers<[1], [0], [0], [1], [0, 0, 1, 1], [], []>} : vector<16x16xbf16>, vector<16x256xbf16>, vector<16x256xf32> -> vector<16x256xf32>
    %106 = arith.addf %102, %105 : vector<16x256xf32>
    %c13 = arith.constant 13 : index
    %c0_28 = arith.constant 0 : index
    %c0_29 = arith.constant 0 : index
    %107 = vector.load %arg4[%c13, %c0_28, %c0_29] : memref<16x16x16xbf16, #tpu.memory_space<vmem>>, vector<1x16x16xbf16>
    %108 = vector.shape_cast %107 : vector<1x16x16xbf16> to vector<16x16xbf16>
    %cst_30 = arith.constant dense<0.000000e+00> : vector<16x256xf32>
    %109 = tpu.matmul %108, %54, %cst_30 {dimension_numbers = #tpu.dot_dimension_numbers<[1], [0], [0], [1], [0, 0, 1, 1], [], []>} : vector<16x16xbf16>, vector<16x256xbf16>, vector<16x256xf32> -> vector<16x256xf32>
    %110 = arith.addf %106, %109 : vector<16x256xf32>
    %c15 = arith.constant 15 : index
    %c0_31 = arith.constant 0 : index
    %c0_32 = arith.constant 0 : index
    %111 = vector.load %arg4[%c15, %c0_31, %c0_32] : memref<16x16x16xbf16, #tpu.memory_space<vmem>>, vector<1x16x16xbf16>
    %112 = vector.shape_cast %111 : vector<1x16x16xbf16> to vector<16x16xbf16>
    %cst_33 = arith.constant dense<0.000000e+00> : vector<16x256xf32>
    %113 = tpu.matmul %112, %47, %cst_33 {dimension_numbers = #tpu.dot_dimension_numbers<[1], [0], [0], [1], [0, 0, 1, 1], [], []>} : vector<16x16xbf16>, vector<16x256xbf16>, vector<16x256xf32> -> vector<16x256xf32>
    %114 = arith.addf %110, %113 : vector<16x256xf32>
    %115 = vector.extract_strided_slice %0 {offsets = [0, 2], sizes = [16, 1], strides = [1, 1]} : vector<16x4xf32> to vector<16x1xf32>
    %116 = vector.broadcast %115 : vector<16x1xf32> to vector<16x256xf32>
    %117 = arith.mulf %114, %116 : vector<16x256xf32>
    %118 = vector.extract_strided_slice %0 {offsets = [0, 3], sizes = [16, 1], strides = [1, 1]} : vector<16x4xf32> to vector<16x1xf32>
    %119 = vector.broadcast %118 : vector<16x1xf32> to vector<16x256xf32>
    %120 = arith.addf %117, %119 : vector<16x256xf32>
    %cst_34 = arith.constant 0.000000e+00 : f32
    %121 = vector.broadcast %cst_34 : f32 to vector<16x256xf32>
    %122 = arith.maximumf %120, %121 : vector<16x256xf32>
    %123 = arith.truncf %122 : vector<16x256xf32> to vector<16x256xbf16>
    %c0_35 = arith.constant 0 : index
    %c0_36 = arith.constant 0 : index
    %124 = vector.load %arg5[%c0_35, %c0_36] : memref<32x16xbf16, #tpu.memory_space<vmem>>, vector<32x16xbf16>
    %cst_37 = arith.constant dense<0.000000e+00> : vector<32x256xf32>
    %125 = tpu.matmul %124, %123, %cst_37 {dimension_numbers = #tpu.dot_dimension_numbers<[1], [0], [0], [1], [0, 0, 1, 1], [], []>} : vector<32x16xbf16>, vector<16x256xbf16>, vector<32x256xf32> -> vector<32x256xf32>
    %126 = vector.extract_strided_slice %1 {offsets = [0, 0], sizes = [32, 1], strides = [1, 1]} : vector<32x2xf32> to vector<32x1xf32>
    %127 = vector.broadcast %126 : vector<32x1xf32> to vector<32x256xf32>
    %128 = arith.mulf %125, %127 : vector<32x256xf32>
    %129 = vector.extract_strided_slice %1 {offsets = [0, 1], sizes = [32, 1], strides = [1, 1]} : vector<32x2xf32> to vector<32x1xf32>
    %130 = vector.broadcast %129 : vector<32x1xf32> to vector<32x256xf32>
    %131 = arith.addf %128, %130 : vector<32x256xf32>
    %cst_38 = arith.constant 0.000000e+00 : f32
    %132 = vector.broadcast %cst_38 : f32 to vector<32x256xf32>
    %133 = arith.maximumf %131, %132 : vector<32x256xf32>
    %c0_39 = arith.constant 0 : index
    %c0_40 = arith.constant 0 : index
    %c0_41 = arith.constant 0 : index
    %c0_42 = arith.constant 0 : index
    %134 = vector.load %arg2[%c0_39, %c0_40, %c0_41, %c0_42] : memref<1x4x32x256xbf16, #tpu.memory_space<vmem>>, vector<1x1x32x256xbf16>
    %135 = vector.shape_cast %134 : vector<1x1x32x256xbf16> to vector<32x256xbf16>
    %136 = arith.extf %135 : vector<32x256xbf16> to vector<32x256xf32>
    %137 = arith.addf %133, %136 : vector<32x256xf32>
    %c0_43 = arith.constant 0 : index
    %c0_44 = arith.constant 0 : index
    %c0_45 = arith.constant 0 : index
    %c0_46 = arith.constant 0 : index
    %138 = vector.load %arg8[%c0_43, %c0_44, %c0_45, %c0_46] : memref<1x4x32x256xf32, #tpu.memory_space<vmem>>, vector<1x1x32x256xf32>
    %139 = vector.shape_cast %138 : vector<1x1x32x256xf32> to vector<32x256xf32>
    %140 = vector.shape_cast %137 : vector<32x256xf32> to vector<1x1x32x256xf32>
    tpu.vector_store %arg8[%c0_43, %c0_44, %c0_45, %c0_46], %140 {strides = array<i32>} : memref<1x4x32x256xf32, #tpu.memory_space<vmem>>, vector<1x1x32x256xf32>,
    %c4 = arith.constant 4 : index
    %c0_47 = arith.constant 0 : index
    %c0_48 = arith.constant 0 : index
    %141 = vector.load %arg4[%c4, %c0_47, %c0_48] : memref<16x16x16xbf16, #tpu.memory_space<vmem>>, vector<1x16x16xbf16>
    %142 = vector.shape_cast %141 : vector<1x16x16xbf16> to vector<16x16xbf16>
    %cst_49 = arith.constant dense<0.000000e+00> : vector<16x256xf32>
    %143 = tpu.matmul %142, %76, %cst_49 {dimension_numbers = #tpu.dot_dimension_numbers<[1], [0], [0], [1], [0, 0, 1, 1], [], []>} : vector<16x16xbf16>, vector<16x256xbf16>, vector<16x256xf32> -> vector<16x256xf32>
    %c6 = arith.constant 6 : index
    %c0_50 = arith.constant 0 : index
    %c0_51 = arith.constant 0 : index
    %144 = vector.load %arg4[%c6, %c0_50, %c0_51] : memref<16x16x16xbf16, #tpu.memory_space<vmem>>, vector<1x16x16xbf16>
    %145 = vector.shape_cast %144 : vector<1x16x16xbf16> to vector<16x16xbf16>
    %cst_52 = arith.constant dense<0.000000e+00> : vector<16x256xf32>
    %146 = tpu.matmul %145, %14, %cst_52 {dimension_numbers = #tpu.dot_dimension_numbers<[1], [0], [0], [1], [0, 0, 1, 1], [], []>} : vector<16x16xbf16>, vector<16x256xbf16>, vector<16x256xf32> -> vector<16x256xf32>
    %147 = arith.addf %143, %146 : vector<16x256xf32>
    %c12 = arith.constant 12 : index
    %c0_53 = arith.constant 0 : index
    %c0_54 = arith.constant 0 : index
    %148 = vector.load %arg4[%c12, %c0_53, %c0_54] : memref<16x16x16xbf16, #tpu.memory_space<vmem>>, vector<1x16x16xbf16>
    %149 = vector.shape_cast %148 : vector<1x16x16xbf16> to vector<16x16xbf16>
    %cst_55 = arith.constant dense<0.000000e+00> : vector<16x256xf32>
    %150 = tpu.matmul %149, %62, %cst_55 {dimension_numbers = #tpu.dot_dimension_numbers<[1], [0], [0], [1], [0, 0, 1, 1], [], []>} : vector<16x16xbf16>, vector<16x256xbf16>, vector<16x256xf32> -> vector<16x256xf32>
    %151 = arith.addf %147, %150 : vector<16x256xf32>
    %c14 = arith.constant 14 : index
    %c0_56 = arith.constant 0 : index
    %c0_57 = arith.constant 0 : index
    %152 = vector.load %arg4[%c14, %c0_56, %c0_57] : memref<16x16x16xbf16, #tpu.memory_space<vmem>>, vector<1x16x16xbf16>
    %153 = vector.shape_cast %152 : vector<1x16x16xbf16> to vector<16x16xbf16>
    %cst_58 = arith.constant dense<0.000000e+00> : vector<16x256xf32>
    %154 = tpu.matmul %153, %54, %cst_58 {dimension_numbers = #tpu.dot_dimension_numbers<[1], [0], [0], [1], [0, 0, 1, 1], [], []>} : vector<16x16xbf16>, vector<16x256xbf16>, vector<16x256xf32> -> vector<16x256xf32>
    %155 = arith.addf %151, %154 : vector<16x256xf32>
    %156 = vector.extract_strided_slice %0 {offsets = [0, 2], sizes = [16, 1], strides = [1, 1]} : vector<16x4xf32> to vector<16x1xf32>
    %157 = vector.broadcast %156 : vector<16x1xf32> to vector<16x256xf32>
    %158 = arith.mulf %155, %157 : vector<16x256xf32>
    %159 = vector.extract_strided_slice %0 {offsets = [0, 3], sizes = [16, 1], strides = [1, 1]} : vector<16x4xf32> to vector<16x1xf32>
    %160 = vector.broadcast %159 : vector<16x1xf32> to vector<16x256xf32>
    %161 = arith.addf %158, %160 : vector<16x256xf32>
    %cst_59 = arith.constant 0.000000e+00 : f32
    %162 = vector.broadcast %cst_59 : f32 to vector<16x256xf32>
    %163 = arith.maximumf %161, %162 : vector<16x256xf32>
    %164 = arith.truncf %163 : vector<16x256xf32> to vector<16x256xbf16>
    %c0_60 = arith.constant 0 : index
    %c0_61 = arith.constant 0 : index
    %165 = vector.load %arg5[%c0_60, %c0_61] : memref<32x16xbf16, #tpu.memory_space<vmem>>, vector<32x16xbf16>
    %cst_62 = arith.constant dense<0.000000e+00> : vector<32x256xf32>
    %166 = tpu.matmul %165, %164, %cst_62 {dimension_numbers = #tpu.dot_dimension_numbers<[1], [0], [0], [1], [0, 0, 1, 1], [], []>} : vector<32x16xbf16>, vector<16x256xbf16>, vector<32x256xf32> -> vector<32x256xf32>
    %167 = vector.extract_strided_slice %1 {offsets = [0, 0], sizes = [32, 1], strides = [1, 1]} : vector<32x2xf32> to vector<32x1xf32>
    %168 = vector.broadcast %167 : vector<32x1xf32> to vector<32x256xf32>
    %169 = arith.mulf %166, %168 : vector<32x256xf32>
    %170 = vector.extract_strided_slice %1 {offsets = [0, 1], sizes = [32, 1], strides = [1, 1]} : vector<32x2xf32> to vector<32x1xf32>
    %171 = vector.broadcast %170 : vector<32x1xf32> to vector<32x256xf32>
    %172 = arith.addf %169, %171 : vector<32x256xf32>
    %cst_63 = arith.constant 0.000000e+00 : f32
    %173 = vector.broadcast %cst_63 : f32 to vector<32x256xf32>
    %174 = arith.maximumf %172, %173 : vector<32x256xf32>
    %c0_64 = arith.constant 0 : index
    %c1 = arith.constant 1 : index
    %c0_65 = arith.constant 0 : index
    %c0_66 = arith.constant 0 : index
    %175 = vector.load %arg2[%c0_64, %c1, %c0_65, %c0_66] : memref<1x4x32x256xbf16, #tpu.memory_space<vmem>>, vector<1x1x32x256xbf16>
    %176 = vector.shape_cast %175 : vector<1x1x32x256xbf16> to vector<32x256xbf16>
    %177 = arith.extf %176 : vector<32x256xbf16> to vector<32x256xf32>
    %178 = arith.addf %174, %177 : vector<32x256xf32>
    %c0_67 = arith.constant 0 : index
    %c1_68 = arith.constant 1 : index
    %c0_69 = arith.constant 0 : index
    %c0_70 = arith.constant 0 : index
    %179 = vector.load %arg8[%c0_67, %c1_68, %c0_69, %c0_70] : memref<1x4x32x256xf32, #tpu.memory_space<vmem>>, vector<1x1x32x256xf32>
    %180 = vector.shape_cast %179 : vector<1x1x32x256xf32> to vector<32x256xf32>
    %181 = vector.shape_cast %178 : vector<32x256xf32> to vector<1x1x32x256xf32>
    tpu.vector_store %arg8[%c0_67, %c1_68, %c0_69, %c0_70], %181 {strides = array<i32>} : memref<1x4x32x256xf32, #tpu.memory_space<vmem>>, vector<1x1x32x256xf32>,
    %c1_71 = arith.constant 1 : index
    %c0_72 = arith.constant 0 : index
    %c0_73 = arith.constant 0 : index
    %182 = vector.load %arg4[%c1_71, %c0_72, %c0_73] : memref<16x16x16xbf16, #tpu.memory_space<vmem>>, vector<1x16x16xbf16>
    %183 = vector.shape_cast %182 : vector<1x16x16xbf16> to vector<16x16xbf16>
    %cst_74 = arith.constant dense<0.000000e+00> : vector<16x256xf32>
    %184 = tpu.matmul %183, %91, %cst_74 {dimension_numbers = #tpu.dot_dimension_numbers<[1], [0], [0], [1], [0, 0, 1, 1], [], []>} : vector<16x16xbf16>, vector<16x256xbf16>, vector<16x256xf32> -> vector<16x256xf32>
    %c3 = arith.constant 3 : index
    %c0_75 = arith.constant 0 : index
    %c0_76 = arith.constant 0 : index
    %185 = vector.load %arg4[%c3, %c0_75, %c0_76] : memref<16x16x16xbf16, #tpu.memory_space<vmem>>, vector<1x16x16xbf16>
    %186 = vector.shape_cast %185 : vector<1x16x16xbf16> to vector<16x16xbf16>
    %cst_77 = arith.constant dense<0.000000e+00> : vector<16x256xf32>
    %187 = tpu.matmul %186, %84, %cst_77 {dimension_numbers = #tpu.dot_dimension_numbers<[1], [0], [0], [1], [0, 0, 1, 1], [], []>} : vector<16x16xbf16>, vector<16x256xbf16>, vector<16x256xf32> -> vector<16x256xf32>
    %188 = arith.addf %184, %187 : vector<16x256xf32>
    %c9 = arith.constant 9 : index
    %c0_78 = arith.constant 0 : index
    %c0_79 = arith.constant 0 : index
    %189 = vector.load %arg4[%c9, %c0_78, %c0_79] : memref<16x16x16xbf16, #tpu.memory_space<vmem>>, vector<1x16x16xbf16>
    %190 = vector.shape_cast %189 : vector<1x16x16xbf16> to vector<16x16xbf16>
    %cst_80 = arith.constant dense<0.000000e+00> : vector<16x256xf32>
    %191 = tpu.matmul %190, %14, %cst_80 {dimension_numbers = #tpu.dot_dimension_numbers<[1], [0], [0], [1], [0, 0, 1, 1], [], []>} : vector<16x16xbf16>, vector<16x256xbf16>, vector<16x256xf32> -> vector<16x256xf32>
    %192 = arith.addf %188, %191 : vector<16x256xf32>
    %c11 = arith.constant 11 : index
    %c0_81 = arith.constant 0 : index
    %c0_82 = arith.constant 0 : index
    %193 = vector.load %arg4[%c11, %c0_81, %c0_82] : memref<16x16x16xbf16, #tpu.memory_space<vmem>>, vector<1x16x16xbf16>
    %194 = vector.shape_cast %193 : vector<1x16x16xbf16> to vector<16x16xbf16>
    %cst_83 = arith.constant dense<0.000000e+00> : vector<16x256xf32>
    %195 = tpu.matmul %194, %69, %cst_83 {dimension_numbers = #tpu.dot_dimension_numbers<[1], [0], [0], [1], [0, 0, 1, 1], [], []>} : vector<16x16xbf16>, vector<16x256xbf16>, vector<16x256xf32> -> vector<16x256xf32>
    %196 = arith.addf %192, %195 : vector<16x256xf32>
    %197 = vector.extract_strided_slice %0 {offsets = [0, 2], sizes = [16, 1], strides = [1, 1]} : vector<16x4xf32> to vector<16x1xf32>
    %198 = vector.broadcast %197 : vector<16x1xf32> to vector<16x256xf32>
    %199 = arith.mulf %196, %198 : vector<16x256xf32>
    %200 = vector.extract_strided_slice %0 {offsets = [0, 3], sizes = [16, 1], strides = [1, 1]} : vector<16x4xf32> to vector<16x1xf32>
    %201 = vector.broadcast %200 : vector<16x1xf32> to vector<16x256xf32>
    %202 = arith.addf %199, %201 : vector<16x256xf32>
    %cst_84 = arith.constant 0.000000e+00 : f32
    %203 = vector.broadcast %cst_84 : f32 to vector<16x256xf32>
    %204 = arith.maximumf %202, %203 : vector<16x256xf32>
    %205 = arith.truncf %204 : vector<16x256xf32> to vector<16x256xbf16>
    %c0_85 = arith.constant 0 : index
    %c0_86 = arith.constant 0 : index
    %206 = vector.load %arg5[%c0_85, %c0_86] : memref<32x16xbf16, #tpu.memory_space<vmem>>, vector<32x16xbf16>
    %cst_87 = arith.constant dense<0.000000e+00> : vector<32x256xf32>
    %207 = tpu.matmul %206, %205, %cst_87 {dimension_numbers = #tpu.dot_dimension_numbers<[1], [0], [0], [1], [0, 0, 1, 1], [], []>} : vector<32x16xbf16>, vector<16x256xbf16>, vector<32x256xf32> -> vector<32x256xf32>
    %208 = vector.extract_strided_slice %1 {offsets = [0, 0], sizes = [32, 1], strides = [1, 1]} : vector<32x2xf32> to vector<32x1xf32>
    %209 = vector.broadcast %208 : vector<32x1xf32> to vector<32x256xf32>
    %210 = arith.mulf %207, %209 : vector<32x256xf32>
    %211 = vector.extract_strided_slice %1 {offsets = [0, 1], sizes = [32, 1], strides = [1, 1]} : vector<32x2xf32> to vector<32x1xf32>
    %212 = vector.broadcast %211 : vector<32x1xf32> to vector<32x256xf32>
    %213 = arith.addf %210, %212 : vector<32x256xf32>
    %cst_88 = arith.constant 0.000000e+00 : f32
    %214 = vector.broadcast %cst_88 : f32 to vector<32x256xf32>
    %215 = arith.maximumf %213, %214 : vector<32x256xf32>
    %c0_89 = arith.constant 0 : index
    %c2 = arith.constant 2 : index
    %c0_90 = arith.constant 0 : index
    %c0_91 = arith.constant 0 : index
    %216 = vector.load %arg2[%c0_89, %c2, %c0_90, %c0_91] : memref<1x4x32x256xbf16, #tpu.memory_space<vmem>>, vector<1x1x32x256xbf16>
    %217 = vector.shape_cast %216 : vector<1x1x32x256xbf16> to vector<32x256xbf16>
    %218 = arith.extf %217 : vector<32x256xbf16> to vector<32x256xf32>
    %219 = arith.addf %215, %218 : vector<32x256xf32>
    %c0_92 = arith.constant 0 : index
    %c2_93 = arith.constant 2 : index
    %c0_94 = arith.constant 0 : index
    %c0_95 = arith.constant 0 : index
    %220 = vector.load %arg8[%c0_92, %c2_93, %c0_94, %c0_95] : memref<1x4x32x256xf32, #tpu.memory_space<vmem>>, vector<1x1x32x256xf32>
    %221 = vector.shape_cast %220 : vector<1x1x32x256xf32> to vector<32x256xf32>
    %222 = vector.shape_cast %219 : vector<32x256xf32> to vector<1x1x32x256xf32>
    tpu.vector_store %arg8[%c0_92, %c2_93, %c0_94, %c0_95], %222 {strides = array<i32>} : memref<1x4x32x256xf32, #tpu.memory_space<vmem>>, vector<1x1x32x256xf32>,
    %c0_96 = arith.constant 0 : index
    %c0_97 = arith.constant 0 : index
    %c0_98 = arith.constant 0 : index
    %223 = vector.load %arg4[%c0_96, %c0_97, %c0_98] : memref<16x16x16xbf16, #tpu.memory_space<vmem>>, vector<1x16x16xbf16>
    %224 = vector.shape_cast %223 : vector<1x16x16xbf16> to vector<16x16xbf16>
    %cst_99 = arith.constant dense<0.000000e+00> : vector<16x256xf32>
    %225 = tpu.matmul %224, %99, %cst_99 {dimension_numbers = #tpu.dot_dimension_numbers<[1], [0], [0], [1], [0, 0, 1, 1], [], []>} : vector<16x16xbf16>, vector<16x256xbf16>, vector<16x256xf32> -> vector<16x256xf32>
    %c2_100 = arith.constant 2 : index
    %c0_101 = arith.constant 0 : index
    %c0_102 = arith.constant 0 : index
    %226 = vector.load %arg4[%c2_100, %c0_101, %c0_102] : memref<16x16x16xbf16, #tpu.memory_space<vmem>>, vector<1x16x16xbf16>
    %227 = vector.shape_cast %226 : vector<1x16x16xbf16> to vector<16x16xbf16>
    %cst_103 = arith.constant dense<0.000000e+00> : vector<16x256xf32>
    %228 = tpu.matmul %227, %91, %cst_103 {dimension_numbers = #tpu.dot_dimension_numbers<[1], [0], [0], [1], [0, 0, 1, 1], [], []>} : vector<16x16xbf16>, vector<16x256xbf16>, vector<16x256xf32> -> vector<16x256xf32>
    %229 = arith.addf %225, %228 : vector<16x256xf32>
    %c8 = arith.constant 8 : index
    %c0_104 = arith.constant 0 : index
    %c0_105 = arith.constant 0 : index
    %230 = vector.load %arg4[%c8, %c0_104, %c0_105] : memref<16x16x16xbf16, #tpu.memory_space<vmem>>, vector<1x16x16xbf16>
    %231 = vector.shape_cast %230 : vector<1x16x16xbf16> to vector<16x16xbf16>
    %cst_106 = arith.constant dense<0.000000e+00> : vector<16x256xf32>
    %232 = tpu.matmul %231, %76, %cst_106 {dimension_numbers = #tpu.dot_dimension_numbers<[1], [0], [0], [1], [0, 0, 1, 1], [], []>} : vector<16x16xbf16>, vector<16x256xbf16>, vector<16x256xf32> -> vector<16x256xf32>
    %233 = arith.addf %229, %232 : vector<16x256xf32>
    %c10 = arith.constant 10 : index
    %c0_107 = arith.constant 0 : index
    %c0_108 = arith.constant 0 : index
    %234 = vector.load %arg4[%c10, %c0_107, %c0_108] : memref<16x16x16xbf16, #tpu.memory_space<vmem>>, vector<1x16x16xbf16>
    %235 = vector.shape_cast %234 : vector<1x16x16xbf16> to vector<16x16xbf16>
    %cst_109 = arith.constant dense<0.000000e+00> : vector<16x256xf32>
    %236 = tpu.matmul %235, %14, %cst_109 {dimension_numbers = #tpu.dot_dimension_numbers<[1], [0], [0], [1], [0, 0, 1, 1], [], []>} : vector<16x16xbf16>, vector<16x256xbf16>, vector<16x256xf32> -> vector<16x256xf32>
    %237 = arith.addf %233, %236 : vector<16x256xf32>
    %238 = vector.extract_strided_slice %0 {offsets = [0, 2], sizes = [16, 1], strides = [1, 1]} : vector<16x4xf32> to vector<16x1xf32>
    %239 = vector.broadcast %238 : vector<16x1xf32> to vector<16x256xf32>
    %240 = arith.mulf %237, %239 : vector<16x256xf32>
    %241 = vector.extract_strided_slice %0 {offsets = [0, 3], sizes = [16, 1], strides = [1, 1]} : vector<16x4xf32> to vector<16x1xf32>
    %242 = vector.broadcast %241 : vector<16x1xf32> to vector<16x256xf32>
    %243 = arith.addf %240, %242 : vector<16x256xf32>
    %cst_110 = arith.constant 0.000000e+00 : f32
    %244 = vector.broadcast %cst_110 : f32 to vector<16x256xf32>
    %245 = arith.maximumf %243, %244 : vector<16x256xf32>
    %246 = arith.truncf %245 : vector<16x256xf32> to vector<16x256xbf16>
    %c0_111 = arith.constant 0 : index
    %c0_112 = arith.constant 0 : index
    %247 = vector.load %arg5[%c0_111, %c0_112] : memref<32x16xbf16, #tpu.memory_space<vmem>>, vector<32x16xbf16>
    %cst_113 = arith.constant dense<0.000000e+00> : vector<32x256xf32>
    %248 = tpu.matmul %247, %246, %cst_113 {dimension_numbers = #tpu.dot_dimension_numbers<[1], [0], [0], [1], [0, 0, 1, 1], [], []>} : vector<32x16xbf16>, vector<16x256xbf16>, vector<32x256xf32> -> vector<32x256xf32>
    %249 = vector.extract_strided_slice %1 {offsets = [0, 0], sizes = [32, 1], strides = [1, 1]} : vector<32x2xf32> to vector<32x1xf32>
    %250 = vector.broadcast %249 : vector<32x1xf32> to vector<32x256xf32>
    %251 = arith.mulf %248, %250 : vector<32x256xf32>
    %252 = vector.extract_strided_slice %1 {offsets = [0, 1], sizes = [32, 1], strides = [1, 1]} : vector<32x2xf32> to vector<32x1xf32>
    %253 = vector.broadcast %252 : vector<32x1xf32> to vector<32x256xf32>
    %254 = arith.addf %251, %253 : vector<32x256xf32>
    %cst_114 = arith.constant 0.000000e+00 : f32
    %255 = vector.broadcast %cst_114 : f32 to vector<32x256xf32>
    %256 = arith.maximumf %254, %255 : vector<32x256xf32>
    %c0_115 = arith.constant 0 : index
    %c3_116 = arith.constant 3 : index
    %c0_117 = arith.constant 0 : index
    %c0_118 = arith.constant 0 : index
    %257 = vector.load %arg2[%c0_115, %c3_116, %c0_117, %c0_118] : memref<1x4x32x256xbf16, #tpu.memory_space<vmem>>, vector<1x1x32x256xbf16>
    %258 = vector.shape_cast %257 : vector<1x1x32x256xbf16> to vector<32x256xbf16>
    %259 = arith.extf %258 : vector<32x256xbf16> to vector<32x256xf32>
    %260 = arith.addf %256, %259 : vector<32x256xf32>
    %c0_119 = arith.constant 0 : index
    %c3_120 = arith.constant 3 : index
    %c0_121 = arith.constant 0 : index
    %c0_122 = arith.constant 0 : index
    %261 = vector.load %arg8[%c0_119, %c3_120, %c0_121, %c0_122] : memref<1x4x32x256xf32, #tpu.memory_space<vmem>>, vector<1x1x32x256xf32>
    %262 = vector.shape_cast %261 : vector<1x1x32x256xf32> to vector<32x256xf32>
    %263 = vector.shape_cast %260 : vector<32x256xf32> to vector<1x1x32x256xf32>
    tpu.vector_store %arg8[%c0_119, %c3_120, %c0_121, %c0_122], %263 {strides = array<i32>} : memref<1x4x32x256xf32, #tpu.memory_space<vmem>>, vector<1x1x32x256xf32>,
    return
  }
  func.func @transform_0(%arg0: i32) -> (i32, i32, i32) {
    %c0_i32 = arith.constant 0 : i32
    %c0_i32_0 = arith.constant 0 : i32
    %c0_i32_1 = arith.constant 0 : i32
    return %arg0, %c0_i32, %c0_i32_0 : i32, i32, i32
  }
  func.func @transform_1(%arg0: i32) -> (i32, i32, i32, i32) {
    %c0_i32 = arith.constant 0 : i32
    %c0_i32_0 = arith.constant 0 : i32
    %c0_i32_1 = arith.constant 0 : i32
    %c0_i32_2 = arith.constant 0 : i32
    return %arg0, %c0_i32, %c0_i32_0, %c0_i32_1 : i32, i32, i32, i32
  }
  func.func @transform_2(%arg0: i32) -> (i32, i32) {
    %c0_i32 = arith.constant 0 : i32
    %c0_i32_0 = arith.constant 0 : i32
    %c0_i32_1 = arith.constant 0 : i32
    return %c0_i32, %c0_i32_0 : i32, i32
  }
  func.func @transform_3(%arg0: i32) -> (i32, i32, i32) {
    %c0_i32 = arith.constant 0 : i32
    %c0_i32_0 = arith.constant 0 : i32
    %c0_i32_1 = arith.constant 0 : i32
    %c0_i32_2 = arith.constant 0 : i32
    return %c0_i32, %c0_i32_0, %c0_i32_1 : i32, i32, i32
  }
  func.func @transform_4(%arg0: i32) -> (i32, i32) {
    %c0_i32 = arith.constant 0 : i32
    %c0_i32_0 = arith.constant 0 : i32
    %c0_i32_1 = arith.constant 0 : i32
    return %c0_i32, %c0_i32_0 : i32, i32
  }
  func.func @transform_5(%arg0: i32) -> (i32, i32) {
    %c0_i32 = arith.constant 0 : i32
    %c0_i32_0 = arith.constant 0 : i32
    %c0_i32_1 = arith.constant 0 : i32
    return %c0_i32, %c0_i32_0 : i32, i32
  }
  func.func @transform_6(%arg0: i32) -> (i32, i32) {
    %c0_i32 = arith.constant 0 : i32
    %c0_i32_0 = arith.constant 0 : i32
    %c0_i32_1 = arith.constant 0 : i32
    return %c0_i32, %c0_i32_0 : i32, i32
  }
  func.func @transform_7(%arg0: i32) -> (i32, i32, i32, i32) {
    %c0_i32 = arith.constant 0 : i32
    %c0_i32_0 = arith.constant 0 : i32
    %c0_i32_1 = arith.constant 0 : i32
    %c0_i32_2 = arith.constant 0 : i32
    return %arg0, %c0_i32, %c0_i32_0, %c0_i32_1 : i32, i32, i32, i32
  }
}

</mosaic_0001>

<bundles_post_ra>
// kernel: tpu_custom_call.1
= control target key start
LH: loop header
LB: loop body
LE: loop exit
PB: predicated region body
PF: predicated region fallthrough
CT: control target
= control target key end

     0   :  { %s3695_s0 = inlined_call_operand.hbm [shape: bf16[2,64,256], index: 0, kind: input, shape index: {}]   ;;  %s3696_s1 = inlined_call_operand.hbm [shape: bf16[2,4,32,256], index: 1, kind: input, shape index: {}]   ;;  %s3697_s2 = inlined_call_operand.vmem [shape: bf16[16,64], index: 2, kind: input, shape index: {}]   ;;  %s3698_s3 = inlined_call_operand.hbm [shape: bf16[16,16,16], index: 3, kind: input, shape index: {}]   ;;  %s3699_s4 = inlined_call_operand.vmem [shape: bf16[32,16], index: 4, kind: input, shape index: {}]   ;;  %s3700_s5 = inlined_call_operand.vmem [shape: f32[16,4], index: 5, kind: input, shape index: {}]   ;;  %s3701_s6 = inlined_call_operand.vmem [shape: f32[32,2], index: 6, kind: input, shape index: {}]   ;;  %s3702_s7 = inlined_call_operand.hbm [shape: f32[2,4,32,256], index: 7, kind: output, shape index: {}]  }
   0x1   :  { %3709 = sst [smem:[#allocation16_spill]] %s3695_s0 }
   0x2   :  { %3710 = sst [smem:[#allocation17_spill]] %s3698_s3 }
   0x3   :  { %12 = vsyncpa [#allocation3], 0 }
   0x4   :  { %14 = vsyncpa [#allocation3 + $0x1], 0 }
   0x5   :  { %15 = vsyncpa [#allocation6], 0 }
   0x6   :  { %17 = vsyncpa [#allocation6 + $0x1], 0 }
   0x7   :  { %18 = vsyncpa [#allocation4], 0 }
   0x8   :  { %20 = vsyncpa [#allocation4 + $0x1], 0  ;;  %s2937_s24 = smov 0   ;;  %s2939_s25 = smov 0  }
   0x9   :  { %s2941_s26 = smov 0   ;;  %s2943_s27 = smov 0  }
   0xa LB: > { %3711 = sst [smem:[#allocation13_spill]] %s2869_s26  ;;  %s2958_s28 = sadd.s32 4294967295, %s2873_s27   ;;  %s2873_s27 = sphi %s2943_s27, %s3745_s27   ;;  %s2869_s26 = sphi %s2941_s26, %s3747_s26   ;;  %s2865_s25 = sphi %s2939_s25, %s3749_s25   ;;  %s2861_s24 = sphi %s2937_s24, %s3748_s24  }
   0xb   : > { %s2407_s29 = sadd.s32 4294967294, %s2873_s27   ;;  %p46_p0 = scmp.ne.s32.totalorder %s2865_s25, %s2861_s24 }
   0xc   : > { %p3703_p1 = scmp.eq.s32.totalorder %s2958_s28, 0  ;;  %p207_p3 = scmp.eq.s32.totalorder %s2407_s29, 1 }
   0xd   : > { %p2408_p5 = scmp.ge.s32.totalorder %s2873_s27, 1  ;;  %p214_p7 = scmp.lt.s32.totalorder %s2873_s27, 3 }
   0xe   : > { %p2967_p4 = por %p3703_p1, %p46_p0  ;;  %p2972_p6 = por %p207_p3, %p46_p0 }
   0xf   : > { %p2977_p8 = pnand %p2408_p5, %p214_p7  ;;  %s2875_s10 = smov [#allocation7]  }
  0x10   : > { %s3712_s30 = scalar_select %p2967_p4, 1, 0 }
  0x11   : > { %s3713_s8 = scalar_select %p2972_p6, 1, 0 }
  0x12   : > { %s3714_s9 = scalar_select %p2977_p8, 1, 0 }
  0x13   : > { %s229_s11 = sshll.u32 %s2875_s10, 4  ;;  %p2594_p9 = pneg %p2977_p8  ;;  %s2981_s11 = int_to_ptr.vmem [resolvable:$true] %s229_s11 }
  0x14   : > { %s2993_s13 = sadd.s32 1, %s2873_s27   ;;  %s33_s14 = sadd.s32 1, %s2869_s26 }
  0x15   : > { %p2988_p11 = pnand %p2594_p9, %p3703_p1  ;;  %3716 = sst [smem:[#allocation14_spill]] %s2993_s13 }
  0x16   : > { %s30_s15 = ssub.s32 %s2873_s27, %s2993_s13  ;;  %s3717_s3 = sld [smem:[#allocation17_spill]] }
  0x17   : > { %p2713_p13 = pneg %p2988_p11 }
  0x1c   : > { %s2711_s18 = scalar_lea.hbm %s3717_s3, 2048 }
  0x1d   : > { %p2712_p12 = scmp.ne.s32.totalorder %s3717_s3, %s2711_s18  ;;  %p2718_p5 = scmp.lt.u32.totalorder %s2711_s18, %s3717_s3 }
  0x1f   : > { %p2714_p0 = pnand %p2713_p13, %p2712_p12 }
  0x21   : > { %p2715_p3 = pneg %p2714_p0 }
  0x23   : > { %p2720_p7 = pnand %p2718_p5, %p2715_p3 }
  0x25   : > { %2723 = shalt.err (!%p2720_p7)
}
  0x26   : > { %s2724_s23 = scalar_lea.vmem %s2981_s11, 2048  ;;  %p2732_p2 = scmp.lt.s32.totalorder %s2981_s11, %s2981_s11 }
  0x27   : > { %p2725_p9 = scmp.ne.s32.totalorder %s2981_s11, %s2724_s23  ;;  %p2733_p6 = scmp.lt.s32.totalorder %s2724_s23, %s2724_s23 }
  0x29   : > { %p2727_p10 = pnand %p2725_p9, %p2713_p13  ;;  %p2734_p4 = por %p2733_p6, %p2732_p2 }
  0x2b   : > { %p2728_p1 = pneg %p2727_p10 }
  0x2d   : > { %p2735_p8 = pnand %p2734_p4, %p2728_p1 }
  0x2f   : > { %2738 = shalt.err (!%p2735_p8)
}
  0x30   : > { %s2876_s29 = smov 64   ;;  %s2877_s10 = smov 4  }
  0x31   : > { %2597 = dma.hbm_to_vmem [thread:$0]  (!%p2988_p11), %s3717_s3, 2048, %s2981_s11, [#allocation6], %s2876_s29, %s2876_s29, %s2877_s10  }
  0x32   : > { %p31_p2 = scmp.eq.s32.totalorder %s30_s15, 0  ;;  %p40_p1 = scmp.ne.s32.totalorder %s2869_s26, %s2865_s25 }
  0x33   : > { %p41_p4 = scmp.eq.s32.totalorder %s2873_s27, 0  ;;  %p2610_p6 = scmp.lt.s32.totalorder %s2873_s27, 2 }
  0x34   : > { %s3024_s18 = scalar_select %p31_p2, %s2869_s26, %s33_s14  }
  0x35   : > { %p42_p8 = por %p41_p4, %p40_p1  ;;  %p3719_p10 = scmp.eq.s32.totalorder %s2958_s28, 1 }
  0x36   : > { %3718 = sst [smem:[#allocation15_spill]] %s3024_s18  ;;  %s3033_s20 = sand.u32 1, %s2869_s26  }
  0x37   : > { %p3028_p12 = por %p3719_p10, %p40_p1  ;;  %s2533_s12 = sshll.u32 %s2873_s27, 10 }
  0x38   : > { %s2411_s21 = sshll.u32 %s3033_s20, 6  ;;  %s3721_s0 = sld [smem:[#allocation16_spill]] }
  0x39   : > { %s256_s14 = scalar_lea.vmem [#allocation2], %s2411_s21  ;;  %p3042_p11 = pnand %p2610_p6, %p42_p8 }
  0x3a   : > { %s263_s23 = sshll.u32 %s256_s14, 4  ;;  %s253_s10 = scalar_lea.sflag [#allocation3], %s3033_s20  ;;  %s3046_s23 = int_to_ptr.vmem [resolvable:$true] %s263_s23 }
  0x3b   : > { %p2741_p0 = pneg %p3042_p11 }
  0x3e   : > { %s3040_s15 = scalar_lea.hbm %s3721_s0, %s2533_s12  ;;  %s2744_s21 = scalar_lea.hbm %s3721_s0, 2048 }
  0x3f   : > { %s2739_s16 = scalar_lea.hbm %s3040_s15, 1024  ;;  %p2745_p7 = scmp.lt.u32.totalorder %s3040_s15, %s3721_s0 }
  0x40   : > { %p2740_p13 = scmp.ne.s32.totalorder %s3040_s15, %s2739_s16  ;;  %p2746_p9 = scmp.lt.u32.totalorder %s2744_s21, %s2739_s16 }
  0x41   : > { %p2748_p1 = scmp.lt.u32.totalorder %s2739_s16, %s3040_s15 }
  0x42   : > { %p2742_p3 = pnand %p2741_p0, %p2740_p13  ;;  %p2747_p2 = por %p2746_p9, %p2745_p7 }
  0x44   : > { %p2743_p5 = pneg %p2742_p3  ;;  %p2749_p4 = por %p2748_p1, %p2747_p2 }
  0x46   : > { %p2750_p6 = pnand %p2749_p4, %p2743_p5 }
  0x48   : > { %2753 = shalt.err (!%p2750_p6)
}
  0x49   : > { %s2754_s14 = scalar_lea.vmem %s3046_s23, 1024  ;;  %s2878_s17 = smov [#allocation2]  }
  0x4a   : > { %p2755_p8 = scmp.ne.s32.totalorder %s3046_s23, %s2754_s14  ;;  %s2759_s12 = sshll.u32 %s2878_s17, 4  ;;  %s2760_s12 = int_to_ptr.vmem [resolvable:$false] %s2759_s12 }
  0x4b   : > { %s2761_s22 = scalar_lea.vmem %s2760_s12, 2048  ;;  %p2762_p3 = scmp.lt.s32.totalorder %s3046_s23, %s2760_s12 }
  0x4c   : > { %p2757_p10 = pnand %p2755_p8, %p2741_p0  ;;  %p2763_p7 = scmp.lt.s32.totalorder %s2761_s22, %s2754_s14 }
  0x4e   : > { %p2758_p13 = pneg %p2757_p10  ;;  %p2764_p9 = por %p2763_p7, %p2762_p3 }
  0x50   : > { %p2765_p2 = pnand %p2764_p9, %p2758_p13 }
  0x52   : > { %2768 = shalt.err (!%p2765_p2)
}
  0x53   : > { %s2879_s16 = smov 128   ;;  %s2880_s21 = smov 8  }
  0x54   : > { %2601 = dma.hbm_to_vmem [thread:$0]  (!%p3042_p11), %s3040_s15, 1024, %s3046_s23, %s253_s10, %s2879_s16, %s2879_s16, %s2880_s21  }
  0x55   : > { %s273_s11 = sand.u32 1, %s2873_s27   ;;  %s2414_s14 = sshll.u32 %s3033_s20, 7 }
  0x56   : > { %s2534_s17 = sshll.u32 %s2873_s27, 11  ;;  %s277_s12 = scalar_lea.vmem [#allocation5], %s2414_s14 }
  0x57   : > { %s284_s22 = sshll.u32 %s277_s12, 4  ;;  %s3085_s18 = scalar_lea.hbm %s3696_s1, %s2534_s17  ;;  %s3087_s22 = int_to_ptr.vmem [resolvable:$true] %s284_s22 }
  0x58   : > { %s3089_s26 = scalar_lea.sflag [#allocation6], %s273_s11  ;;  %s2769_s13 = scalar_lea.hbm %s3085_s18, 2048 }
  0x59   : > { %p2770_p5 = scmp.ne.s32.totalorder %s3085_s18, %s2769_s13  ;;  %s2774_s0 = scalar_lea.hbm %s3696_s1, 4096 }
  0x5a   : > { %p2775_p6 = scmp.lt.u32.totalorder %s3085_s18, %s3696_s1  ;;  %p2776_p8 = scmp.lt.u32.totalorder %s2774_s0, %s2769_s13 }
  0x5b   : > { %p2772_p1 = pnand %p2770_p5, %p2741_p0  ;;  %p2778_p13 = scmp.lt.u32.totalorder %s2769_s13, %s3085_s18 }
  0x5c   : > { %p2777_p10 = por %p2776_p8, %p2775_p6 }
  0x5d   : > { %p2773_p4 = pneg %p2772_p1 }
  0x5e   : > { %p2779_p3 = por %p2778_p13, %p2777_p10 }
  0x60   : > { %p2780_p7 = pnand %p2779_p3, %p2773_p4 }
  0x62   : > { %2783 = shalt.err (!%p2780_p7)
}
  0x63   : > { %s2784_s10 = scalar_lea.vmem %s3087_s22, 2048  ;;  %s2881_s11 = smov [#allocation5]  }
  0x64   : > { %p2785_p9 = scmp.ne.s32.totalorder %s3087_s22, %s2784_s10  ;;  %s2789_s14 = sshll.u32 %s2881_s11, 4  ;;  %s2790_s14 = int_to_ptr.vmem [resolvable:$false] %s2789_s14 }
  0x65   : > { %s2791_s17 = scalar_lea.vmem %s2790_s14, 4096  ;;  %p2792_p1 = scmp.lt.s32.totalorder %s3087_s22, %s2790_s14 }
  0x66   : > { %p2787_p2 = pnand %p2785_p9, %p2741_p0  ;;  %p2793_p6 = scmp.lt.s32.totalorder %s2791_s17, %s2784_s10 }
  0x68   : > { %p2788_p5 = pneg %p2787_p2  ;;  %p2794_p8 = por %p2793_p6, %p2792_p1 }
  0x6a   : > { %p2795_p10 = pnand %p2794_p8, %p2788_p5 }
  0x6c   : > { %2798 = shalt.err (!%p2795_p10)
}
  0x6d   : > { %2604 = dma.hbm_to_vmem [thread:$0]  (!%p3042_p11), %s3085_s18, 2048, %s3087_s22, %s3089_s26, %s2879_s16, %s2879_s16, %s2880_s21  }
  0x6e   : > { %p3723_p0 = scmp.ne.s32.totalorder %s3714_s9, 0 }
  0x6f   : > { %s3121_s13 = sand.u32 (!%p3723_p0), 1, %s2865_s25   ;;  %p3724_p4 = scmp.ne.s32.totalorder (!%p3723_p0), %s3712_s30, 0 }
  0x70   : > { %296 = sbr.rel (%p3723_p0) target bundleno = 1575 (0x627), region = 48  ;;  %s2418_s12 = sshll.u32 (!%p3723_p0), %s3121_s13, 6 }
  0x71   : > { %s299_s20 = scalar_lea.sflag (!%p3723_p0), [#allocation3], %s3121_s13  ;;  %s3125_s15 = scalar_lea.vmem (!%p3723_p0), [#allocation2], %s2418_s12 }
  0x77   : > { %2844 = dma.done.wait (%p3724_p4), %s299_s20, 1024  }
  0x78   : > { %2846 = vsyncadd (%p3724_p4), %s299_s20, 4294966272  ;;  %s307_s26 = sand.u32 1, %s2958_s28   ;;  %s2419_s9 = sshll.u32 %s3121_s13, 7 }
  0x79   : > { %s308_s18 = scalar_lea.sflag [#allocation6], %s307_s26  ;;  %s3133_s29 = scalar_lea.vmem [#allocation5], %s2419_s9 }
  0x7a   : > { %2848 = dma.done.wait (%p3724_p4), %s308_s18, 2048  }
  0x7b   : > { %2850 = vsyncadd (%p3724_p4), %s308_s18, 4294965248  ;;  %p3725_p11 = scmp.eq.s32.totalorder %s2958_s28, 0 }
  0x7d   : > { %2852 = dma.done.wait (%p3725_p11), [#allocation6], 2048   ;;  %p3726_p13 = pmov %p3725_p11 }
  0x7e   : > { %v2882_v0 = vmov 0   ;;  %v2883_v1 = vmov 1   ;;  %v2674_v2 = vld [vmem:[%s3125_s15 + $0x4] ss:$8 sps:$4 sm:$0xff]   ;;  %v2676_v3 = vld [vmem:[%s3125_s15] ss:$8 sps:$4 sm:$0xff]   ;;  %v494_v37 = vlaneseq }
  0x7f   : > { %2854 = vsyncadd (%p3726_p13), [#allocation6], 4294965248  ;;  %451 = vmatprep.mubr.bf16.mxu0 %v2882_v0  ;;  %2664 = vset.pattern.permute.xlu0 %v2882_v0  ;;  %v2677_v4 = vld [vmem:[%s3125_s15 + $0x14] ss:$8 sps:$4 sm:$0xff]   ;;  %v2679_v5 = vld [vmem:[%s3125_s15 + $0x10] ss:$8 sps:$4 sm:$0xff]  }
  0x80   : > { %2665 = vset.pattern.permute.xlu1 %v2883_v1  ;;  %876 = vmatprep.mubr.bf16.mxu1 %v2882_v0  ;;  %v2680_v6 = vld [vmem:[%s3125_s15 + $0x24] ss:$8 sps:$4 sm:$0xff]   ;;  %v2682_v7 = vld [vmem:[%s3125_s15 + $0x20] ss:$8 sps:$4 sm:$0xff]   ;;  %v2683_v8 = vld [vmem:[%s3125_s15 + $0x34] ss:$8 sps:$4 sm:$0xff]  }
  0x81   : > { %419 = vmatprep.subr.bf16.mxu0 %v2674_v2  ;;  %v3157_v9 = vld [vmem:[%s3700_s5] sm:$0xff]  ;;  %v3162_v10 = vld [vmem:[%s3700_s5 + $0x8] sm:$0xff]  ;;  %vm415_vm0 = vcmask 523264   ;;  %v2685_v11 = vld [vmem:[%s3125_s15 + $0x30] ss:$8 sps:$4 sm:$0xff]   ;;  %v2884_v13 = vmov 2  }
  0x82   : > { %420 = vmatpush1.bf16.msra.mxu0 %v2676_v3  ;;  %464 = vperm.xlu0 %2664, %v3157_v9   ;;  %v2686_v12 = vld [vmem:[%s3697_s2] sm:$0xff]   ;;  %s2885_s23 = smov 16   ;;  %v2687_v36 = vld [vmem:[#allocation7 + $0x28] sm:$0xff]   ;;  %vm567_vm1 = vcmask 130048   ;;  %s2886_s10 = smov 17   ;;  %v3192_v38 = vand.u32 127, %v494_v37 }
  0x83   : > { %421 = vmatprep.subr.bf16.mxu0 %v2677_v4  ;;  %477 = vperm.xlu1 %2665, %v3157_v9   ;;  %s2887_s11 = smov 127   ;;  %s2888_s14 = smov 1   ;;  %v2890_v40 = vmov 3   ;;  %v552_v43 = vshrl.u32 %v494_v37, 7  ;;  %vm2894_vm7 = vmmov 1   ;;  %v2693_v44 = vld [vmem:[#allocation7 + $0x60] sm:$0xff]  }
  0x84   : > { %s2889_s17 = smov 15   ;;  %v496_v39 = vadd.s32 128, %v3192_v38  ;;  %v501_v42 = vand.u32 15, %v3192_v38  ;;  %s2891_s12 = smov 113   ;;  %vm521_vm13 = vcmp.ge.s32.totalorder %v3192_v38, 16  ;;  %v2694_v45 = vld [vmem:[#allocation7 + $0x70] sm:$0xff]  }
  0x85   : > { %s2892_s20 = smov 112   ;;  %v3214_v46 = vsub.s32 0, %v552_v43  ;;  %s2893_s15 = smov 111   ;;  %vm579_vm14 = vmpackc.low %vm2894_vm7, %vm521_vm13  ;;  %v3260_v55 = vsub.s32 4, %v552_v43  ;;  %v356_v50 = vld [vmem:[%s3701_s6] sm:$0xff]  ;;  %v357_v52 = vld [vmem:[%s3701_s6 + $0x8] sm:$0xff] }
  0x86   : > { %422 = vmatpush1.bf16.msra.mxu0 %v2679_v5  ;;  %469 = vperm.xlu0 %2664, %v3162_v10   ;;  %v508_v41 = vand.u32 15, %v496_v39  ;;  %vm524_vm3 = vcmp.lt.s32.totalorder %v496_v39, 240  ;;  %vm3206_vm4 = vcmp.ge.s32.totalorder %v501_v42, 1  ;;  %vm3238_vm10 = vcmp.lt.s32.totalorder %v501_v42, 15  ;;  %s2421_s26 = sshll.u32 %s3121_s13, 8 }
  0x87   : > { %423 = vmatprep.subr.bf16.mxu0 %v2680_v6  ;;  %481 = vperm.xlu1 %2665, %v3162_v10   ;;  %vm733_vm8 = vmpackc.low %vm524_vm3, %vm2894_vm7  ;;  %v580_v56 = vsel %vm579_vm14, 65537, %v2882_v0  ;;  %vm535_vm7 = vcmask 138240   ;;  %v2688_v6 = vld [vmem:[#allocation7 + $0x68] sm:$0xff]   ;;  %s3477_s9 = scalar_lea.vmem [#allocation8], %s2421_s26 }
  0x88   : > { %vm3201_vm2 = vcmp.ge.s32.totalorder %v508_v41, 1  ;;  %v3229_v49 = vsel %vm733_vm8, 65537, %v2882_v0  ;;  %vm3231_vm9 = vcmp.lt.s32.totalorder %v508_v41, 15  ;;  %vm543_vm15 = vmand %vm521_vm13, %vm3206_vm4  ;;  %v584_v57 = vrot.slane %v580_v56, %v3214_v46  ;;  %v2692_v41 = vld [vmem:[#allocation7 + $0x20] sm:$0xff]  }
  0x89   : > { %vm698_vm5 = vmand %vm524_vm3, %vm3201_vm2  ;;  %v738_v51 = vrot.slane %v3229_v49, %v3214_v46  ;;  %v588_v58 = vrot.slane %v580_v56, %v3260_v55  ;;  %v359_v56 = vld [vmem:[%s3701_s6 + $0x18] sm:$0xff] }
  0x8a   : > { %424 = vmatpush1.bf16.msra.mxu0 %v2682_v7  ;;  %2666 = vset.pattern.permute.xlu0 %v2884_v13  ;;  %vm703_vm6 = vmpackc.low %vm698_vm5, %vm3206_vm4 }
  0x8b   : > { %425 = vmatprep.subr.bf16.mxu0 %v2683_v8  ;;  %2667 = vset.pattern.permute.xlu1 %v2884_v13  ;;  %v3220_v47 = vsel %vm703_vm6, 65537, %v2882_v0  ;;  %vm760_vm11 = vmand %vm524_vm3, %vm3231_vm9  ;;  %vm589_vm3 = vcmp.ne.s16.totalorder %v584_v57, 0  ;;  %vm3268_vm5 = vcmp.ne.s16.totalorder %v588_v58, 0  ;;  %v358_v57 = vld [vmem:[%s3701_s6 + $0x10] sm:$0xff] }
  0x8c   : > { %v708_v48 = vrot.slane %v3220_v47, %v3214_v46  ;;  %vm765_vm12 = vmpackc.low %vm760_vm11, %vm3238_vm10 }
  0x8d   : > { %v3248_v53 = vsel %vm765_vm12, 65537, %v2882_v0  ;;  %vm641_vm6 = vmpackc.low %vm3201_vm2, %vm3206_vm4  ;;  %vm629_vm4 = vcmask 7168  }
  0x8e   : > { %426 = vmatpush1.bf16.msra.mxu0 %v2685_v11  ;;  %v770_v54 = vrot.slane %v3248_v53, %v3214_v46 }
  0x91   : > { %2431 = vmatmul.mubr.msk.bf16.vlgmr.msra.gmra.mrb[0].mxu0 %vm415_vm0, %v2686_v12  ;;  %vm549_vm0 = vmpackc.low %vm3201_vm2, %vm543_vm15 }
  0x92   : > { %825 = vmatprep.mubr.bf16.mxu0 %v2882_v0  ;;  %v550_v59 = vsel %vm549_vm0, 65537, %v2882_v0  ;;  %vm671_vm2 = vmpackc.low %vm3231_vm9, %vm3238_vm10  ;;  %vm659_vm0 = vcmask 1039360  }
  0x93   : > { %v554_v62 = vrot.slane %v550_v59, %v3214_v46  ;;  %v558_v63 = vrot.slane %v550_v59, %v3260_v55  ;;  %vm605_vm15 = vmand %vm521_vm13, %vm3238_vm10  ;;  %vm597_vm10 = vcmask 121856  }
  0x95   : > { %vm559_vm8 = vcmp.ne.s16.totalorder %v554_v62, 0  ;;  %vm560_vm11 = vcmp.ne.s16.totalorder %v558_v63, 0 }
 0x101   : > { %v465_v14 = vpop.permute.xlu0 %464 }
 0x102   : > { %v478_v15 = vpop.permute.xlu1 %477 }
 0x105   : > { %v470_v19 = vpop.permute.xlu0 %469 }
 0x106   : > { %v482_v26 = vpop.permute.xlu1 %481 }
 0x164   : > { %v453_v16 = vpop.f32.mrb[0].mxu0 }
 0x165   : > { %v472_v17 = vmul.f32 %v465_v14, %v453_v16  ;;  %v455_v18 = vpop.f32.mrb[1].mxu0 }
 0x166   : > { %v473_v20 = vmul.f32 %v465_v14, %v455_v18  ;;  %v457_v21 = vpop.f32.mrb[2].mxu0 }
 0x167   : > { %v484_v22 = vadd.f32 %v478_v15, %v472_v17  ;;  %v474_v23 = vmul.f32 %v470_v19, %v457_v21  ;;  %v459_v24 = vpop.f32.mrb[3].mxu0 }
 0x168   : > { %v485_v25 = vadd.f32 %v478_v15, %v473_v20  ;;  %v475_v27 = vmul.f32 %v470_v19, %v459_v24  ;;  %v672_v19 = vsel %vm671_vm2, 65537, %v2882_v0  ;;  %vm721_vm2 = vcmask 916480  }
 0x169   : > { %v486_v28 = vadd.f32 %v482_v26, %v474_v23  ;;  %v488_v30 = vmax.f32 %v484_v22, 0.0  ;;  %v680_v23 = vrot.slane %v672_v19, %v3260_v55 }
 0x16a   : > { %v487_v29 = vadd.f32 %v482_v26, %v475_v27  ;;  %v489_v32 = vmax.f32 %v485_v25, 0.0  ;;  %v2689_v25 = vld [vmem:[#allocation7 + $0x38] sm:$0xff]   ;;  %v2489_v27 = vld [vmem:[%s3133_s29 + $0x40] sm:$0xff] }
 0x16b   : > { %v490_v31 = vmax.f32 %v486_v28, 0.0  ;;  %v2690_v26 = vld [vmem:[#allocation7 + $0x78] sm:$0xff]   ;;  %v676_v28 = vrot.slane %v672_v19, %v3214_v46 }
 0x16c   : > { %v491_v33 = vmax.f32 %v487_v29, 0.0 }
 0x16d   : > { %v3173_v34 = vpack.c.bf16 %v490_v31, %v488_v30 }
 0x16e   : > { %v3175_v35 = vpack.c.bf16 %v491_v33, %v489_v32  ;;  %v2691_v32 = vld [vmem:[#allocation7 + $0x30] sm:$0xff]  }
 0x16f   : > { %565 = vrot.lane.b32.xlu1 %v3173_v34, %s2885_s23 }
 0x170   : > { %563 = vrot.lane.b32.xlu0 %v3175_v35, %s2885_s23  ;;  %844 = vmatprep.subr.bf16.mxu1 %v3175_v35 }
 0x171   : > { %845 = vmatpush1.bf16.msra.mxu1 %v3173_v34 }
 0x173   : > { %533 = vrot.lane.b32.xlu1 %v3173_v34, %s2886_s10 }
 0x174   : > { %530 = vrot.lane.b32.xlu0 %v3175_v35, %s2886_s10  ;;  %2436 = vmatmul.mubr.msk.bf16.vlgmr.msra.gmra.mrb[0].mxu1 %vm567_vm1, %v2687_v36 }
 0x175   : > { %930 = vmatprep.mubr.bf16.mxu1 %v2882_v0 }
 0x177   : > { %657 = vrot.lane.b32.xlu1 %v3175_v35, %s2887_s11 }
 0x178   : > { %655 = vrot.lane.b32.xlu0 %v3173_v34, %s2887_s11  ;;  %s2302_s11 = sshll.u32 %s3477_s9, 4  ;;  %s3648_s11 = int_to_ptr.vmem [resolvable:$true] %s2302_s11 }
 0x17b   : > { %627 = vrot.lane.b32.xlu1 %v3173_v34, %s2888_s14 }
 0x17c   : > { %625 = vrot.lane.b32.xlu0 %v3175_v35, %s2888_s14 }
 0x17f   : > { %595 = vrot.lane.b32.xlu1 %v3173_v34, %s2889_s17 }
 0x180   : > { %593 = vrot.lane.b32.xlu0 %v3175_v35, %s2889_s17 }
 0x183   : > { %1008 = vperm.xlu1 %2667, %v3162_v10  }
 0x184   : > { %1004 = vperm.xlu0 %2666, %v3157_v9  }
 0x187   : > { %2668 = vset.pattern.permute.xlu1 %v2890_v40 }
 0x188   : > { %2669 = vset.pattern.permute.xlu0 %v2890_v40  ;;  %1016 = vperm.xlu1 %2668, %v3157_v9   ;;  %v642_v9 = vsel %vm641_vm6, 65537, %v2882_v0  ;;  %vm3318_vm6 = vcmp.ne.s16.totalorder %v680_v23, 0 }
 0x189   : > { %1020 = vperm.xlu0 %2669, %v3162_v10   ;;  %v646_v14 = vrot.slane %v642_v9, %v3214_v46  ;;  %v650_v15 = vrot.slane %v642_v9, %v3260_v55 }
 0x18b   : > { %vm651_vm12 = vcmp.ne.s16.totalorder %v646_v14, 0  ;;  %vm3298_vm14 = vcmp.ne.s16.totalorder %v650_v15, 0 }
 0x18c   : > { %685 = vrot.lane.b32.xlu1 %v3173_v34, %s2891_s12 }
 0x18d   : > { %717 = vrot.lane.b32.xlu0 %v3173_v34, %s2892_s20  ;;  %2671 = vset.pattern.permute.xlu1 %v2882_v0 }
 0x18e   : > { %2670 = vset.pattern.permute.xlu0 %v2882_v0 }
 0x190   : > { %687 = vrot.lane.b32.xlu1 %v3175_v35, %s2891_s12 }
 0x191   : > { %747 = vrot.lane.b32.xlu0 %v3173_v34, %s2893_s15 }
 0x194   : > { %719 = vrot.lane.b32.xlu1 %v3175_v35, %s2892_s20  ;;  %s2799_s20 = scalar_lea.vmem %s3648_s11, 4096 }
 0x195   : > { %1108 = vperm.xlu0 %2670, %v356_v50   ;;  %p2800_p3 = scmp.ne.s32.totalorder %s3648_s11, %s2799_s20 }
 0x197   : > { %p2801_p7 = pnand %p2800_p3, %p3028_p12 }
 0x198   : > { %749 = vrot.lane.b32.xlu1 %v3175_v35, %s2893_s15  ;;  %s2895_s15 = smov [#allocation8]  }
 0x199   : > { %1123 = vperm.xlu0 %2670, %v359_v56   ;;  %p2802_p9 = pneg %p2801_p7  ;;  %s2803_s26 = sshll.u32 %s2895_s15, 4  ;;  %s2804_s26 = int_to_ptr.vmem [resolvable:$false] %s2803_s26 }
 0x19a   : > { %s2805_s18 = scalar_lea.vmem %s2804_s26, 8192  ;;  %p2806_p2 = scmp.lt.s32.totalorder %s3648_s11, %s2804_s26 }
 0x19b   : > { %p2807_p5 = scmp.lt.s32.totalorder %s2805_s18, %s2799_s20 }
 0x19c   : > { %1113 = vperm.xlu1 %2671, %v357_v52  }
 0x19d   : > { %2673 = vset.pattern.permute.xlu0 %v2883_v1  ;;  %p2808_p1 = por %p2807_p5, %p2806_p2 }
 0x19e   : > { %1139 = vperm.xlu0 %2673, %v357_v52  }
 0x19f   : > { %p2809_p6 = pnand %p2808_p1, %p2802_p9 }
 0x1a0   : > { %1118 = vperm.xlu1 %2671, %v358_v57  }
 0x1a4   : > { %2672 = vset.pattern.permute.xlu1 %v2883_v1 }
 0x1a5   : > { %1135 = vperm.xlu1 %2672, %v356_v50  }
 0x1a9   : > { %1143 = vperm.xlu1 %2672, %v358_v57  }
 0x1ad   : > { %1147 = vperm.xlu1 %2672, %v359_v56  }
 0x1e1   : > { %v566_v60 = vpop.permute.xlu1 %565 }
 0x1e2   : > { %v564_v2 = vpop.permute.xlu0 %563 }
 0x1e3   : > { %v3275_v3 = vsel %vm567_vm1, %v566_v60, %v564_v2  ;;  %v573_v4 = vsel %vm567_vm1, %v564_v2, %v566_v60 }
 0x1e4   : > { %v3282_v5 = vsel %vm589_vm3, %v573_v4, 0  ;;  %2438 = vmatprep.subr.msk.bf16.mxu1 %vm3268_vm5, %v3275_v3  ;;  %vm611_vm3 = vmpackc.low %vm3231_vm9, %vm605_vm15  ;;  %vm681_vm9 = vcmp.ne.s16.totalorder %v676_v28, 0 }
 0x1e5   : > { %v534_v7 = vpop.permute.xlu1 %533  ;;  %899 = vmatpush1.bf16.msra.mxu1 %v3282_v5  ;;  %v612_v30 = vsel %vm611_vm3, 65537, %v2882_v0 }
 0x1e6   : > { %v531_v8 = vpop.permute.xlu0 %530  ;;  %v620_v31 = vrot.slane %v612_v30, %v3260_v55  ;;  %v616_v40 = vrot.slane %v612_v30, %v3214_v46  ;;  %v2695_v30 = vld [vmem:[%s3699_s4] sm:$0xff]  }
 0x1e7   : > { %v536_v10 = vsel %vm535_vm7, %v534_v7, %v531_v8  ;;  %v541_v11 = vsel %vm535_vm7, %v531_v8, %v534_v7  ;;  %v2707_v46 = vld [vmem:[#allocation7 + $0x40] sm:$0xff]  }
 0x1e8   : > { %v561_v12 = vsel %vm559_vm8, %v541_v11, 0  ;;  %2439 = vmatmul.mubr.msk.bf16.vlgmr.msra.gmra.mrb[0].mxu1 %vm567_vm1, %v2688_v6  ;;  %2441 = vmatprep.subr.msk.bf16.mxu1 %vm560_vm11, %v536_v10  ;;  %vm622_vm13 = vcmp.ne.s16.totalorder %v620_v31, 0  ;;  %vm621_vm7 = vcmp.ne.s16.totalorder %v616_v40, 0  ;;  %v2696_v31 = vld [vmem:[%s3699_s4 + $0x8] sm:$0xff]   ;;  %vm713_vm11 = vcmp.ne.s16.totalorder %v708_v48, 0  ;;  %v2699_v48 = vld [vmem:[#allocation7 + $0x18] sm:$0xff]  }
 0x1e9   : > { %v658_v13 = vpop.permute.xlu1 %657  ;;  %957 = vmatpush1.bf16.msra.mxu1 %v561_v12  ;;  %988 = vmatprep.mubr.bf16.mxu1 %v2882_v0 }
 0x1ea   : > { %v656_v16 = vpop.permute.xlu0 %655  ;;  %1208 = vmatprep.subr.bf16.mxu1 %v3175_v35 }
 0x1eb   : > { %v3325_v29 = vsel %vm659_vm0, %v658_v13, %v656_v16  ;;  %v660_v33 = vsel %vm659_vm0, %v656_v16, %v658_v13  ;;  %vm775_vm0 = vcmp.ne.s16.totalorder %v770_v54, 0 }
 0x1ec   : > { %v3335_v38 = vsel %vm681_vm9, %v660_v33, 0 }
 0x1ed   : > { %v628_v17 = vpop.permute.xlu1 %627 }
 0x1ee   : > { %v626_v20 = vpop.permute.xlu0 %625 }
 0x1ef   : > { %v3303_v21 = vsel %vm629_vm4, %v628_v17, %v626_v20  ;;  %v635_v22 = vsel %vm629_vm4, %v626_v20, %v628_v17 }
 0x1f0   : > { %v3306_v24 = vsel %vm651_vm12, %v635_v22, 0  ;;  %2433 = vmatprep.subr.msk.bf16.mxu0 %vm3298_vm14, %v3303_v21  ;;  %vm743_vm12 = vcmp.ne.s16.totalorder %v738_v51, 0  ;;  %v2702_v51 = vld [vmem:[#allocation7 + $0x58] sm:$0xff]  }
 0x1f1   : > { %794 = vmatpush1.bf16.msra.mxu0 %v3306_v24  ;;  %v596_v36 = vpop.permute.xlu1 %595 }
 0x1f2   : > { %v594_v37 = vpop.permute.xlu0 %593 }
 0x1f3   : > { %v598_v39 = vsel %vm597_vm10, %v596_v36, %v594_v37  ;;  %v603_v42 = vsel %vm597_vm10, %v594_v37, %v596_v36 }
 0x1f4   : > { %2434 = vmatmul.mubr.msk.bf16.vlgmr.msra.gmra.mrb[4].mxu0 %vm567_vm1, %v2689_v25  ;;  %2442 = vmatmul.mubr.msk.bf16.vlgmr.msra.gmra.mrb[0].mxu1 %vm567_vm1, %v2690_v26  ;;  %v623_v43 = vsel %vm621_vm7, %v603_v42, 0 }
 0x1f5   : > { %1209 = vmatpush1.bf16.msra.mxu1 %v3173_v34  ;;  %1240 = vmatprep.mubr.bf16.mxu1 %v2882_v0 }
 0x1f6   : > { %2450 = vmatprep.subr.msk.bf16.mxu1 %vm3318_vm6, %v3325_v29  ;;  %1085 = vmatprep.mubr.bf16.mxu0 %v2882_v0 }
 0x1fc   : > { %2448 = vmatmul.mubr.msk.bf16.vlgmr.msra.gmra.mrb[4].mxu1 %vm567_vm1, %v2691_v32 }
 0x1fd   : > { %1260 = vmatpush1.bf16.msra.mxu1 %v3335_v38  ;;  %1291 = vmatprep.mubr.bf16.mxu1 %v2882_v0 }
 0x1fe   : > { %2453 = vmatprep.subr.msk.bf16.mxu1 %vm622_vm13, %v598_v39 }
 0x202   : > { %v3365_v58 = vpop.permute.xlu1 %1008 }
 0x203   : > { %v3367_v59 = vpop.permute.xlu0 %1004 }
 0x207   : > { %v3370_v9 = vpop.permute.xlu1 %1016 }
 0x208   : > { %2451 = vmatmul.mubr.msk.bf16.vlgmr.msra.gmra.mrb[4].mxu1 %vm567_vm1, %v2692_v41  ;;  %v3375_v14 = vpop.permute.xlu0 %1020 }
 0x209   : > { %1314 = vmatpush1.bf16.msra.mxu1 %v623_v43  ;;  %1345 = vmatprep.mubr.bf16.mxu1 %v2882_v0 }
 0x20a   : > { %2456 = vmatprep.subr.msk.bf16.mxu1 %vm3268_vm5, %v3275_v3  ;;  %vm689_vm5 = vcmask 924672  }
 0x20b   : > { %v686_v37 = vpop.permute.xlu1 %685 }
 0x214   : > { %2454 = vmatmul.mubr.msk.bf16.vlgmr.msra.gmra.mrb[4].mxu1 %vm567_vm1, %v2693_v44 }
 0x215   : > { %1372 = vmatpush1.bf16.msra.mxu1 %v3282_v5  ;;  %1403 = vmatprep.mubr.bf16.mxu1 %v2882_v0 }
 0x220   : > { %2457 = vmatmul.mubr.msk.bf16.vlgmr.msra.gmra.mrb[4].mxu1 %vm567_vm1, %v2694_v45 }
 0x221   : > { %1849 = vmatprep.mubr.bf16.mxu1 %v2882_v0 }
 0x2c7   : > { %v827_v60 = vpop.f32.mrb[4].mxu0  ;;  %v990_v61 = vpop.f32.mrb[0].mxu1 }
 0x2c8   : > { %v2536_v62 = vadd.f32 %v990_v61, %v827_v60  ;;  %v829_v63 = vpop.f32.mrb[5].mxu0  ;;  %v992_v2 = vpop.f32.mrb[1].mxu1  ;;  %v712_v60 = vrot.slane %v3220_v47, %v3260_v55  ;;  %v2698_v47 = vld [vmem:[%s3699_s4 + $0x8] sm:$0xff]  }
 0x2c9   : > { %v2537_v3 = vadd.f32 %v992_v2, %v829_v63  ;;  %v831_v4 = vpop.f32.mrb[6].mxu0  ;;  %v994_v5 = vpop.f32.mrb[2].mxu1 }
 0x2ca   : > { %v1011_v6 = vmul.f32 %v2536_v62, %v3367_v59  ;;  %v2538_v7 = vadd.f32 %v994_v5, %v831_v4  ;;  %v833_v1 = vpop.f32.mrb[7].mxu0  ;;  %v996_v8 = vpop.f32.mrb[3].mxu1  ;;  %vm714_vm8 = vcmp.ne.s16.totalorder %v712_v60, 0  ;;  %v742_v4 = vrot.slane %v3229_v49, %v3260_v55  ;;  %v2697_v5 = vld [vmem:[%s3699_s4] sm:$0xff]   ;;  %v2701_v49 = vld [vmem:[#allocation7 + $0x48] sm:$0xff]  }
 0x2cb   : > { %v1012_v10 = vmul.f32 %v2537_v3, %v3367_v59  ;;  %v2539_v11 = vadd.f32 %v996_v8, %v833_v1  ;;  %v688_v61 = vpop.permute.xlu1 %687  ;;  %v2705_v8 = vld [vmem:[#allocation7 + $0x10] sm:$0xff]  }
 0x2cc   : > { %v1023_v12 = vadd.f32 %v3370_v9, %v1011_v6  ;;  %v1013_v13 = vmul.f32 %v2538_v7, %v3365_v58  ;;  %v690_v6 = vsel %vm689_vm5, %v686_v37, %v688_v61  ;;  %v695_v7 = vsel %vm689_vm5, %v688_v61, %v686_v37 }
 0x2cd   : > { %v1024_v15 = vadd.f32 %v3370_v9, %v1012_v10  ;;  %v1014_v16 = vmul.f32 %v2539_v11, %v3365_v58  ;;  %vm3409_vm4 = vcmp.ne.s16.totalorder %v742_v4, 0  ;;  %v718_v10 = vpop.permute.xlu0 %717  ;;  %v715_v11 = vsel %vm713_vm11, %v690_v6, 0  ;;  %v1168_v4 = vld [vmem:[%s3133_s29 + $0x10] sm:$0xff] }
 0x2ce   : > { %v1025_v17 = vadd.f32 %v3375_v14, %v1013_v13  ;;  %v1027_v20 = vmax.f32 %v1023_v12, 0.0 }
 0x2cf   : > { %v1026_v19 = vadd.f32 %v3375_v14, %v1014_v16  ;;  %v1028_v23 = vmax.f32 %v1024_v15, 0.0  ;;  %v720_v1 = vpop.permute.xlu1 %719  ;;  %v2700_v16 = vld [vmem:[#allocation7 + $0x8] sm:$0xff]  }
 0x2d0   : > { %v1029_v22 = vmax.f32 %v1025_v17, 0.0  ;;  %v3415_v12 = vsel %vm721_vm2, %v720_v1, %v718_v10  ;;  %v722_v13 = vsel %vm721_vm2, %v718_v10, %v720_v1 }
 0x2d1   : > { %v1030_v25 = vmax.f32 %v1026_v19, 0.0  ;;  %v3430_v15 = vsel %vm743_vm12, %v722_v13, 0  ;;  %v3449_v19 = vpop.permute.xlu0 %747 }
 0x2d2   : > { %v1031_v26 = vpack.c.bf16 %v1029_v22, %v1027_v20 }
 0x2d3   : > { %v1032_v28 = vpack.c.bf16 %v1030_v25, %v1028_v23  ;;  %v3447_v17 = vpop.permute.xlu1 %749  ;;  %v1166_v25 = vld [vmem:[%s3133_s29] sm:$0xff] }
 0x2d5   : > { %1053 = vmatprep.subr.bf16.mxu0 %v1032_v28 }
 0x2d6   : > { %1054 = vmatpush1.bf16.msra.mxu0 %v1031_v26 }
 0x2d7   : > { %v3451_v18 = vpop.permute.xlu1 %1113 }
 0x2d9   : > { %2445 = vmatmul.mubr.msk.bf16.vlgmr.msra.gmra.mrb[8].mxu0 %vm567_vm1, %v2695_v30 }
 0x2da   : > { %1095 = vmatprep.mubr.bf16.mxu0 %v2882_v0 }
 0x2db   : > { %v3455_v20 = vpop.permute.xlu1 %1118 }
 0x2df   : > { %v3459_v22 = vpop.permute.xlu1 %1135 }
 0x2e1   : > { %2446 = vmatmul.mubr.msk.bf16.gmra.mrb[12].mxu0 %vm567_vm1, %v2696_v31 }
 0x2e2   : > { %1484 = vmatprep.mubr.bf16.mxu0 %v2882_v0 }
 0x2f3   : > { %v1405_v32 = vpop.f32.mrb[4].mxu1 }
 0x2f4   : > { %v1418_v33 = vmul.f32 %v1405_v32, %v3367_v59  ;;  %v1407_v36 = vpop.f32.mrb[5].mxu1  ;;  %v1167_v32 = vld [vmem:[%s3133_s29 + $0x8] sm:$0xff] }
 0x2f5   : > { %v1419_v39 = vmul.f32 %v1407_v36, %v3367_v59  ;;  %v1409_v40 = vpop.f32.mrb[6].mxu1 }
 0x2f6   : > { %v1422_v41 = vadd.f32 %v1418_v33, %v3370_v9  ;;  %v1420_v42 = vmul.f32 %v1409_v40, %v3365_v58  ;;  %v1411_v43 = vpop.f32.mrb[7].mxu1 }
 0x2f7   : > { %v1423_v44 = vadd.f32 %v1419_v39, %v3370_v9  ;;  %v1421_v45 = vmul.f32 %v1411_v43, %v3365_v58  ;;  %v1170_v39 = vunpack.c.l.bf16 %v1166_v25 }
 0x2f8   : > { %v1424_v50 = vadd.f32 %v1420_v42, %v3375_v14  ;;  %v1426_v56 = vmax.f32 %v1422_v41, 0.0  ;;  %v1171_v42 = vunpack.c.h.bf16 %v1166_v25  ;;  %v1175_v25 = vunpack.c.h.bf16 %v1168_v4 }
 0x2f9   : > { %v1425_v52 = vadd.f32 %v1421_v45, %v3375_v14  ;;  %v1427_v62 = vmax.f32 %v1423_v44, 0.0  ;;  %v3472_v44 = vpop.permute.xlu1 %1143  ;;  %v1172_v45 = vunpack.c.l.bf16 %v1167_v32 }
 0x2fa   : > { %v1428_v57 = vmax.f32 %v1424_v50, 0.0 }
 0x2fb   : > { %v1429_v63 = vmax.f32 %v1425_v52, 0.0 }
 0x2fc   : > { %v1430_v2 = vpack.c.bf16 %v1428_v57, %v1426_v56  ;;  %v1173_v56 = vunpack.c.h.bf16 %v1167_v32 }
 0x2fd   : > { %v1431_v3 = vpack.c.bf16 %v1429_v63, %v1427_v62 }
 0x2ff   : > { %1452 = vmatprep.subr.bf16.mxu0 %v1431_v3 }
 0x300   : > { %1453 = vmatpush1.bf16.msra.mxu0 %v1430_v2 }
 0x301   : > { %2475 = vmatprep.subr.msk.bf16.mxu0 %vm714_vm8, %v695_v7 }
 0x303   : > { %2460 = vmatmul.mubr.msk.bf16.vlgmr.msra.gmra.mrb[16].mxu0 %vm567_vm1, %v2697_v5 }
 0x304   : > { %1574 = vmatpush1.bf16.msra.mxu0 %v715_v11  ;;  %1494 = vmatprep.mubr.bf16.mxu0 %v2882_v0 }
 0x305   : > { %2478 = vmatprep.subr.msk.bf16.mxu0 %vm3409_vm4, %v3415_v12 }
 0x30b   : > { %2461 = vmatmul.mubr.msk.bf16.gmra.mrb[20].mxu0 %vm567_vm1, %v2698_v47  ;;  %v1169_v47 = vld [vmem:[%s3133_s29 + $0x18] sm:$0xff] }
 0x30c   : > { %1605 = vmatprep.mubr.bf16.mxu0 %v2882_v0 }
 0x313   : > { %2476 = vmatmul.mubr.msk.bf16.vlgmr.msra.gmra.mrb[24].mxu0 %vm567_vm1, %v2699_v48  ;;  %v3484_v48 = vpop.permute.xlu1 %1147 }
 0x314   : > { %1625 = vmatpush1.bf16.msra.mxu0 %v3430_v15  ;;  %1656 = vmatprep.mubr.bf16.mxu0 %v2882_v0 }
 0x315   : > { %1678 = vmatprep.subr.bf16.mxu0 %v3175_v35 }
 0x31f   : > { %2479 = vmatmul.mubr.msk.bf16.vlgmr.msra.gmra.mrb[24].mxu0 %vm567_vm1, %v2700_v16  ;;  %v1174_v16 = vunpack.c.l.bf16 %v1168_v4 }
 0x320   : > { %1679 = vmatpush1.bf16.msra.mxu0 %v3173_v34  ;;  %1710 = vmatprep.mubr.bf16.mxu0 %v2882_v0 }
 0x321   : > { %2483 = vmatprep.subr.msk.bf16.mxu0 %vm3298_vm14, %v3303_v21  ;;  %v3453_v21 = vpop.permute.xlu0 %1108  ;;  %vm751_vm14 = vcmask 908288  }
 0x32b   : > { %2481 = vmatmul.mubr.msk.bf16.vlgmr.msra.gmra.mrb[24].mxu0 %vm567_vm1, %v2701_v49 }
 0x32c   : > { %1737 = vmatpush1.bf16.msra.mxu0 %v3306_v24  ;;  %1768 = vmatprep.mubr.bf16.mxu0 %v2882_v0  ;;  %v3457_v24 = vpop.permute.xlu0 %1123 }
 0x330   : > { %v3465_v33 = vpop.permute.xlu0 %1139 }
 0x337   : > { %2484 = vmatmul.mubr.msk.bf16.vlgmr.msra.gmra.mrb[24].mxu0 %vm567_vm1, %v2702_v51 }
 0x338   : > { %2213 = vmatprep.mubr.bf16.mxu0 %v2882_v0 }
 0x3ac   : > { %v1087_v23 = vpop.f32.mrb[8].mxu0 }
 0x3ad   : > { %v1126_v26 = vmul.f32 %v3453_v21, %v1087_v23  ;;  %v1089_v28 = vpop.f32.mrb[9].mxu0 }
 0x3ae   : > { %v1127_v30 = vmul.f32 %v3453_v21, %v1089_v28  ;;  %v1091_v31 = vpop.f32.mrb[10].mxu0 }
 0x3af   : > { %v1128_v36 = vmul.f32 %v3451_v18, %v1091_v31  ;;  %v1093_v37 = vpop.f32.mrb[11].mxu0  ;;  %v1150_v40 = vadd.f32 %v3459_v22, %v1126_v26 }
 0x3b0   : > { %v1129_v41 = vmul.f32 %v3451_v18, %v1093_v37  ;;  %v1151_v43 = vadd.f32 %v3459_v22, %v1127_v30  ;;  %v1176_v30 = vunpack.c.l.bf16 %v1169_v47 }
 0x3b1   : > { %v1152_v50 = vadd.f32 %v3465_v33, %v1128_v36  ;;  %v1158_v52 = vmax.f32 %v1150_v40, 0.0  ;;  %v1177_v36 = vunpack.c.h.bf16 %v1169_v47 }
 0x3b2   : > { %v1153_v57 = vadd.f32 %v3465_v33, %v1129_v41  ;;  %v1159_v60 = vmax.f32 %v1151_v43, 0.0 }
 0x3b3   : > { %v1160_v61 = vmax.f32 %v1152_v50, 0.0  ;;  %v1178_v62 = vadd.f32 %v1170_v39, %v1158_v52  ;;  %v2462_v52 = vld [vmem:[%s3133_s29 + $0x20] sm:$0xff] }
 0x3b4   : > { %v1161_v63 = vmax.f32 %v1153_v57, 0.0  ;;  %v1179_v2 = vadd.f32 %v1171_v42, %v1159_v60  ;;  %v1097_v3 = vpop.f32.mrb[12].mxu0 }
 0x3b5   : > { %v1180_v5 = vadd.f32 %v1172_v45, %v1160_v61  ;;  %1186 = vst [vmem:[%s3477_s9] sm:$0xff] %v1178_v62  ;;  %v1130_v6 = vmul.f32 %v3455_v20, %v1097_v3  ;;  %v1099_v7 = vpop.f32.mrb[13].mxu0  ;;  %v2463_v62 = vld [vmem:[%s3133_s29 + $0x28] sm:$0xff] }
 0x3b6   : > { %v1181_v1 = vadd.f32 %v1173_v56, %v1161_v63  ;;  %1187 = vst [vmem:[%s3477_s9 + $0x8] sm:$0xff] %v1179_v2  ;;  %v1131_v10 = vmul.f32 %v3455_v20, %v1099_v7  ;;  %v1101_v11 = vpop.f32.mrb[14].mxu0  ;;  %v1534_v2 = vunpack.c.l.bf16 %v2462_v52 }
 0x3b7   : > { %1188 = vst [vmem:[%s3477_s9 + $0x10] sm:$0xff] %v1180_v5  ;;  %v1154_v13 = vadd.f32 %v3472_v44, %v1130_v6  ;;  %v1132_v49 = vmul.f32 %v3457_v24, %v1101_v11  ;;  %v1103_v51 = vpop.f32.mrb[15].mxu0  ;;  %v1535_v6 = vunpack.c.h.bf16 %v2462_v52  ;;  %v1536_v11 = vunpack.c.l.bf16 %v2463_v62 }
 0x3b8   : > { %1189 = vst [vmem:[%s3477_s9 + $0x18] sm:$0xff] %v1181_v1  ;;  %v1155_v23 = vadd.f32 %v3472_v44, %v1131_v10  ;;  %v1133_v26 = vmul.f32 %v3457_v24, %v1103_v51 }
 0x3b9   : > { %v1162_v28 = vmax.f32 %v1154_v13, 0.0  ;;  %v1156_v31 = vadd.f32 %v3484_v48, %v1132_v49 }
 0x3ba   : > { %v1163_v32 = vmax.f32 %v1155_v23, 0.0  ;;  %v1157_v37 = vadd.f32 %v3484_v48, %v1133_v26 }
 0x3bb   : > { %v1182_v39 = vadd.f32 %v1174_v16, %v1162_v28  ;;  %v1164_v40 = vmax.f32 %v1156_v31, 0.0  ;;  %v1537_v16 = vunpack.c.h.bf16 %v2463_v62  ;;  %v2464_v28 = vld [vmem:[%s3133_s29 + $0x30] sm:$0xff] }
 0x3bc   : > { %v1183_v41 = vadd.f32 %v1175_v25, %v1163_v32  ;;  %v1165_v42 = vmax.f32 %v1157_v37, 0.0  ;;  %v1539_v52 = vunpack.c.h.bf16 %v2464_v28 }
 0x3bd   : > { %1190 = vst [vmem:[%s3477_s9 + $0x20] sm:$0xff] %v1182_v39  ;;  %v1184_v43 = vadd.f32 %v1176_v30, %v1164_v40  ;;  %v2465_v40 = vld [vmem:[%s3133_s29 + $0x38] sm:$0xff] }
 0x3be   : > { %1191 = vst [vmem:[%s3477_s9 + $0x28] sm:$0xff] %v1183_v41  ;;  %v1185_v45 = vadd.f32 %v1177_v36, %v1165_v42  ;;  %v1538_v42 = vunpack.c.l.bf16 %v2464_v28 }
 0x3bf   : > { %1192 = vst [vmem:[%s3477_s9 + $0x30] sm:$0xff] %v1184_v43 }
 0x3c0   : > { %1193 = vst [vmem:[%s3477_s9 + $0x38] sm:$0xff] %v1185_v45 }
 0x3d6   : > { %v1486_v50 = vpop.f32.mrb[16].mxu0 }
 0x3d7   : > { %v1505_v56 = vmul.f32 %v1486_v50, %v3453_v21  ;;  %v1488_v57 = vpop.f32.mrb[17].mxu0 }
 0x3d8   : > { %v1506_v60 = vmul.f32 %v1488_v57, %v3453_v21  ;;  %v1490_v61 = vpop.f32.mrb[18].mxu0 }
 0x3d9   : > { %v1513_v63 = vadd.f32 %v1505_v56, %v3459_v22  ;;  %v1507_v3 = vmul.f32 %v1490_v61, %v3451_v18  ;;  %v1492_v4 = vpop.f32.mrb[19].mxu0  ;;  %v1540_v61 = vunpack.c.l.bf16 %v2465_v40 }
 0x3da   : > { %v1514_v5 = vadd.f32 %v1506_v60, %v3459_v22  ;;  %v1508_v7 = vmul.f32 %v1492_v4, %v3451_v18 }
 0x3db   : > { %v1521_v1 = vmax.f32 %v1513_v63, 0.0  ;;  %v1515_v10 = vadd.f32 %v1507_v3, %v3465_v33 }
 0x3dc   : > { %v1522_v47 = vmax.f32 %v1514_v5, 0.0  ;;  %v1516_v13 = vadd.f32 %v1508_v7, %v3465_v33 }
 0x3dd   : > { %v1542_v49 = vadd.f32 %v1534_v2, %v1521_v1  ;;  %v1523_v51 = vmax.f32 %v1515_v10, 0.0  ;;  %v1541_v2 = vunpack.c.h.bf16 %v2465_v40 }
 0x3de   : > { %v1543_v23 = vadd.f32 %v1535_v6, %v1522_v47  ;;  %v1524_v25 = vmax.f32 %v1516_v13, 0.0  ;;  %v1496_v26 = vpop.f32.mrb[20].mxu0 }
 0x3df   : > { %2466 = vst [vmem:[%s3477_s9 + $0x40] sm:$0xff] %v1542_v49  ;;  %v1544_v30 = vadd.f32 %v1536_v11, %v1523_v51  ;;  %v1509_v31 = vmul.f32 %v1496_v26, %v3455_v20  ;;  %v1498_v32 = vpop.f32.mrb[21].mxu0 }
 0x3e0   : > { %2467 = vst [vmem:[%s3477_s9 + $0x48] sm:$0xff] %v1543_v23  ;;  %v1545_v36 = vadd.f32 %v1537_v16, %v1524_v25  ;;  %v1510_v37 = vmul.f32 %v1498_v32, %v3455_v20  ;;  %v1500_v39 = vpop.f32.mrb[22].mxu0 }
 0x3e1   : > { %2468 = vst [vmem:[%s3477_s9 + $0x50] sm:$0xff] %v1544_v30  ;;  %v1517_v41 = vadd.f32 %v1509_v31, %v3472_v44  ;;  %v1511_v43 = vmul.f32 %v1500_v39, %v3457_v24  ;;  %v1502_v45 = vpop.f32.mrb[23].mxu0 }
 0x3e2   : > { %2469 = vst [vmem:[%s3477_s9 + $0x58] sm:$0xff] %v1545_v36  ;;  %v1518_v50 = vadd.f32 %v1510_v37, %v3472_v44  ;;  %v1512_v56 = vmul.f32 %v1502_v45, %v3457_v24  ;;  %v2706_v45 = vld [vmem:[#allocation7] sm:$0xff]  }
 0x3e3   : > { %v1525_v57 = vmax.f32 %v1517_v41, 0.0  ;;  %v1519_v60 = vadd.f32 %v1511_v43, %v3484_v48  ;;  %v774_v41 = vrot.slane %v3248_v53, %v3260_v55  ;;  %v757_v43 = vsel %vm751_vm14, %v3447_v17, %v3449_v19  ;;  %v2704_v55 = vld [vmem:[%s3699_s4 + $0x8] sm:$0xff]   ;;  %v2708_v53 = vld [vmem:[#allocation7 + $0x50] sm:$0xff]  }
 0x3e4   : > { %v1526_v62 = vmax.f32 %v1518_v50, 0.0  ;;  %v1520_v63 = vadd.f32 %v1512_v56, %v3484_v48  ;;  %v2490_v50 = vld [vmem:[%s3133_s29 + $0x48] sm:$0xff] }
 0x3e5   : > { %v1546_v3 = vadd.f32 %v1538_v42, %v1525_v57  ;;  %v1527_v4 = vmax.f32 %v1519_v60, 0.0  ;;  %v2703_v42 = vld [vmem:[%s3699_s4] sm:$0xff]   ;;  %vm776_vm15 = vcmp.ne.s16.totalorder %v774_v41, 0  ;;  %v1900_v60 = vunpack.c.h.bf16 %v2489_v27 }
 0x3e6   : > { %v1547_v5 = vadd.f32 %v1539_v52, %v1526_v62  ;;  %v1528_v6 = vmax.f32 %v1520_v63, 0.0  ;;  %v1899_v52 = vunpack.c.l.bf16 %v2489_v27 }
 0x3e7   : > { %2470 = vst [vmem:[%s3477_s9 + $0x60] sm:$0xff] %v1546_v3  ;;  %v1548_v7 = vadd.f32 %v1540_v61, %v1527_v4 }
 0x3e8   : > { %2471 = vst [vmem:[%s3477_s9 + $0x68] sm:$0xff] %v1547_v5  ;;  %v1549_v1 = vadd.f32 %v1541_v2, %v1528_v6  ;;  %v1901_v2 = vunpack.c.l.bf16 %v2490_v50  ;;  %v1902_v5 = vunpack.c.h.bf16 %v2490_v50 }
 0x3e9   : > { %2472 = vst [vmem:[%s3477_s9 + $0x70] sm:$0xff] %v1548_v7 }
 0x3ea   : > { %2473 = vst [vmem:[%s3477_s9 + $0x78] sm:$0xff] %v1549_v1 }
 0x40a   : > { %v1770_v10 = vpop.f32.mrb[24].mxu0 }
 0x40b   : > { %v1783_v11 = vmul.f32 %v1770_v10, %v3367_v59  ;;  %v1772_v47 = vpop.f32.mrb[25].mxu0 }
 0x40c   : > { %v1784_v13 = vmul.f32 %v1772_v47, %v3367_v59  ;;  %v1774_v16 = vpop.f32.mrb[26].mxu0  ;;  %v2491_v47 = vld [vmem:[%s3133_s29 + $0x50] sm:$0xff] }
 0x40d   : > { %v1787_v49 = vadd.f32 %v1783_v11, %v3370_v9  ;;  %v1785_v51 = vmul.f32 %v1774_v16, %v3365_v58  ;;  %v1776_v23 = vpop.f32.mrb[27].mxu0 }
 0x40e   : > { %v1788_v25 = vadd.f32 %v1784_v13, %v3370_v9  ;;  %v1786_v26 = vmul.f32 %v1776_v23, %v3365_v58 }
 0x40f   : > { %v1789_v28 = vadd.f32 %v1785_v51, %v3375_v14  ;;  %v1791_v31 = vmax.f32 %v1787_v49, 0.0 }
 0x410   : > { %v1790_v30 = vadd.f32 %v1786_v26, %v3375_v14  ;;  %v1792_v36 = vmax.f32 %v1788_v25, 0.0  ;;  %v2492_v26 = vld [vmem:[%s3133_s29 + $0x58] sm:$0xff] }
 0x411   : > { %v1793_v32 = vmax.f32 %v1789_v28, 0.0 }
 0x412   : > { %v1794_v37 = vmax.f32 %v1790_v30, 0.0  ;;  %v1903_v30 = vunpack.c.l.bf16 %v2491_v47 }
 0x413   : > { %v1795_v39 = vpack.c.bf16 %v1793_v32, %v1791_v31 }
 0x414   : > { %v1796_v40 = vpack.c.bf16 %v1794_v37, %v1792_v36  ;;  %v1904_v37 = vunpack.c.h.bf16 %v2491_v47 }
 0x416   : > { %1817 = vmatprep.subr.bf16.mxu1 %v1796_v40 }
 0x417   : > { %1818 = vmatpush1.bf16.msra.mxu1 %v1795_v39 }
 0x418   : > { %2502 = vmatprep.subr.msk.bf16.mxu1 %vm3409_vm4, %v3415_v12  ;;  %v752_v12 = vsel %vm751_vm14, %v3449_v19, %v3447_v17 }
 0x41a   : > { %2487 = vmatmul.mubr.msk.bf16.vlgmr.msra.gmra.mrb[8].mxu1 %vm567_vm1, %v2703_v42  ;;  %v1905_v42 = vunpack.c.l.bf16 %v2492_v26 }
 0x41b   : > { %1938 = vmatpush1.bf16.msra.mxu1 %v3430_v15  ;;  %1859 = vmatprep.mubr.bf16.mxu1 %v2882_v0  ;;  %v777_v15 = vsel %vm775_vm0, %v752_v12, 0 }
 0x41c   : > { %2505 = vmatprep.subr.msk.bf16.mxu1 %vm776_vm15, %v757_v43 }
 0x422   : > { %2488 = vmatmul.mubr.msk.bf16.gmra.mrb[12].mxu1 %vm567_vm1, %v2704_v55 }
 0x423   : > { %1969 = vmatprep.mubr.bf16.mxu1 %v2882_v0 }
 0x42a   : > { %2503 = vmatmul.mubr.msk.bf16.vlgmr.msra.gmra.mrb[16].mxu1 %vm567_vm1, %v2705_v8  ;;  %v1906_v8 = vunpack.c.h.bf16 %v2492_v26 }
 0x42b   : > { %1989 = vmatpush1.bf16.msra.mxu1 %v777_v15  ;;  %2020 = vmatprep.mubr.bf16.mxu1 %v2882_v0 }
 0x42c   : > { %2508 = vmatprep.subr.msk.bf16.mxu1 %vm3318_vm6, %v3325_v29 }
 0x436   : > { %2506 = vmatmul.mubr.msk.bf16.vlgmr.msra.gmra.mrb[16].mxu1 %vm567_vm1, %v2706_v45 }
 0x437   : > { %2043 = vmatpush1.bf16.msra.mxu1 %v3335_v38  ;;  %2074 = vmatprep.mubr.bf16.mxu1 %v2882_v0 }
 0x438   : > { %2100 = vmatprep.subr.bf16.mxu1 %v3175_v35 }
 0x442   : > { %2509 = vmatmul.mubr.msk.bf16.vlgmr.msra.gmra.mrb[16].mxu1 %vm567_vm1, %v2707_v46 }
 0x443   : > { %2101 = vmatpush1.bf16.msra.mxu1 %v3173_v34  ;;  %2132 = vmatprep.mubr.bf16.mxu1 %v2882_v0 }
 0x44e   : > { %2511 = vmatmul.mubr.msk.bf16.vlgmr.msra.gmra.mrb[16].mxu1 %vm567_vm1, %v2708_v53 }
 0x4ed   : > { %v1851_v54 = vpop.f32.mrb[8].mxu1 }
 0x4ee   : > { %v1870_v29 = vmul.f32 %v1851_v54, %v3453_v21  ;;  %v1853_v17 = vpop.f32.mrb[9].mxu1 }
 0x4ef   : > { %v1871_v38 = vmul.f32 %v1853_v17, %v3453_v21  ;;  %v1855_v19 = vpop.f32.mrb[10].mxu1 }
 0x4f0   : > { %v1878_v35 = vadd.f32 %v1870_v29, %v3459_v22  ;;  %v1872_v56 = vmul.f32 %v1855_v19, %v3451_v18  ;;  %v1857_v34 = vpop.f32.mrb[11].mxu1 }
 0x4f1   : > { %v1879_v57 = vadd.f32 %v1871_v38, %v3459_v22  ;;  %v1873_v61 = vmul.f32 %v1857_v34, %v3451_v18 }
 0x4f2   : > { %v1886_v62 = vmax.f32 %v1878_v35, 0.0  ;;  %v1880_v63 = vadd.f32 %v1872_v56, %v3465_v33 }
 0x4f3   : > { %v1887_v3 = vmax.f32 %v1879_v57, 0.0  ;;  %v1881_v4 = vadd.f32 %v1873_v61, %v3465_v33 }
 0x4f4   : > { %v1907_v6 = vadd.f32 %v1899_v52, %v1886_v62  ;;  %v1888_v7 = vmax.f32 %v1880_v63, 0.0 }
 0x4f5   : > { %v1908_v1 = vadd.f32 %v1900_v60, %v1887_v3  ;;  %v1889_v10 = vmax.f32 %v1881_v4, 0.0  ;;  %v1861_v11 = vpop.f32.mrb[12].mxu1  ;;  %v2709_v4 = vld [vmem:[%s3699_s4] sm:$0xff]  }
 0x4f6   : > { %2493 = vst [vmem:[%s3477_s9 + $0x80] sm:$0xff] %v1907_v6  ;;  %v1909_v13 = vadd.f32 %v1901_v2, %v1888_v7  ;;  %v1874_v16 = vmul.f32 %v1861_v11, %v3455_v20  ;;  %v1863_v49 = vpop.f32.mrb[13].mxu1 }
 0x4f7   : > { %2494 = vst [vmem:[%s3477_s9 + $0x88] sm:$0xff] %v1908_v1  ;;  %v1910_v51 = vadd.f32 %v1902_v5, %v1889_v10  ;;  %v1875_v23 = vmul.f32 %v1863_v49, %v3455_v20  ;;  %v1865_v25 = vpop.f32.mrb[14].mxu1  ;;  %v2517_v10 = vld [vmem:[%s3133_s29 + $0x68] sm:$0xff] }
 0x4f8   : > { %2495 = vst [vmem:[%s3477_s9 + $0x90] sm:$0xff] %v1909_v13  ;;  %v1882_v28 = vadd.f32 %v1874_v16, %v3472_v44  ;;  %v1876_v31 = vmul.f32 %v1865_v25, %v3457_v24  ;;  %v1867_v32 = vpop.f32.mrb[15].mxu1 }
 0x4f9   : > { %2496 = vst [vmem:[%s3477_s9 + $0x98] sm:$0xff] %v1910_v51  ;;  %v1883_v36 = vadd.f32 %v1875_v23, %v3472_v44  ;;  %v1877_v39 = vmul.f32 %v1867_v32, %v3457_v24 }
 0x4fa   : > { %v1890_v40 = vmax.f32 %v1882_v28, 0.0  ;;  %v1884_v41 = vadd.f32 %v1876_v31, %v3484_v48 }
 0x4fb   : > { %v1891_v43 = vmax.f32 %v1883_v36, 0.0  ;;  %v1885_v55 = vadd.f32 %v1877_v39, %v3484_v48 }
 0x4fc   : > { %v1911_v12 = vadd.f32 %v1903_v30, %v1890_v40  ;;  %v1892_v15 = vmax.f32 %v1884_v41, 0.0  ;;  %v2266_v30 = vunpack.c.h.bf16 %v2517_v10 }
 0x4fd   : > { %v1912_v45 = vadd.f32 %v1904_v37, %v1891_v43  ;;  %v1893_v46 = vmax.f32 %v1885_v55, 0.0  ;;  %v2519_v55 = vld [vmem:[%s3133_s29 + $0x78] sm:$0xff] }
 0x4fe   : > { %2497 = vst [vmem:[%s3477_s9 + $0xa0] sm:$0xff] %v1911_v12  ;;  %v1913_v53 = vadd.f32 %v1905_v42, %v1892_v15 }
 0x4ff   : > { %2498 = vst [vmem:[%s3477_s9 + $0xa8] sm:$0xff] %v1912_v45  ;;  %v1914_v54 = vadd.f32 %v1906_v8, %v1893_v46 }
 0x500   : > { %2499 = vst [vmem:[%s3477_s9 + $0xb0] sm:$0xff] %v1913_v53 }
 0x501   : > { %2500 = vst [vmem:[%s3477_s9 + $0xb8] sm:$0xff] %v1914_v54 }
 0x521   : > { %v2134_v27 = vpop.f32.mrb[16].mxu1 }
 0x522   : > { %v2147_v29 = vmul.f32 %v2134_v27, %v3367_v59  ;;  %v2136_v17 = vpop.f32.mrb[17].mxu1 }
 0x523   : > { %v2148_v38 = vmul.f32 %v2136_v17, %v3367_v59  ;;  %v2138_v19 = vpop.f32.mrb[18].mxu1 }
 0x524   : > { %v2151_v50 = vadd.f32 %v2147_v29, %v3370_v9  ;;  %v2149_v35 = vmul.f32 %v2138_v19, %v3365_v58  ;;  %v2140_v52 = vpop.f32.mrb[19].mxu1  ;;  %v2269_v29 = vunpack.c.l.bf16 %v2519_v55  ;;  %v2270_v19 = vunpack.c.h.bf16 %v2519_v55 }
 0x525   : > { %v2152_v56 = vadd.f32 %v2148_v38, %v3370_v9  ;;  %v2150_v34 = vmul.f32 %v2140_v52, %v3365_v58  ;;  %v2710_v58 = vld [vmem:[%s3699_s4 + $0x8] sm:$0xff]  }
 0x526   : > { %v2153_v57 = vadd.f32 %v2149_v35, %v3375_v14  ;;  %v2155_v61 = vmax.f32 %v2151_v50, 0.0 }
 0x527   : > { %v2154_v60 = vadd.f32 %v2150_v34, %v3375_v14  ;;  %v2156_v63 = vmax.f32 %v2152_v56, 0.0  ;;  %v2516_v14 = vld [vmem:[%s3133_s29 + $0x60] sm:$0xff] }
 0x528   : > { %v2157_v62 = vmax.f32 %v2153_v57, 0.0  ;;  %v2263_v47 = vunpack.c.l.bf16 %v2516_v14  ;;  %v2264_v49 = vunpack.c.h.bf16 %v2516_v14 }
 0x529   : > { %v2158_v2 = vmax.f32 %v2154_v60, 0.0 }
 0x52a   : > { %v2159_v59 = vpack.c.bf16 %v2157_v62, %v2155_v61 }
 0x52b   : > { %v2160_v3 = vpack.c.bf16 %v2158_v2, %v2156_v63 }
 0x52d   : > { %2181 = vmatprep.subr.bf16.mxu0 %v2160_v3 }
 0x52e   : > { %2182 = vmatpush1.bf16.msra.mxu0 %v2159_v59 }
 0x531   : > { %2514 = vmatmul.mubr.msk.bf16.vlgmr.msra.gmra.mrb[28].mxu0 %vm567_vm1, %v2709_v4 }
 0x532   : > { %2223 = vmatprep.mubr.bf16.mxu0 %v2882_v0 }
 0x539   : > { %2515 = vmatmul.mubr.msk.bf16.gmra.mrb[32].mxu0 %vm567_vm1, %v2710_v58 }
 0x604   : > { %v2215_v9 = vpop.f32.mrb[28].mxu0 }
 0x605   : > { %v2234_v5 = vmul.f32 %v2215_v9, %v3453_v21  ;;  %v2217_v6 = vpop.f32.mrb[29].mxu0 }
 0x606   : > { %v2235_v7 = vmul.f32 %v2217_v6, %v3453_v21  ;;  %v2219_v1 = vpop.f32.mrb[30].mxu0  ;;  %v2265_v21 = vunpack.c.l.bf16 %v2517_v10 }
 0x607   : > { %v2242_v11 = vadd.f32 %v2234_v5, %v3459_v22  ;;  %v2236_v0 = vmul.f32 %v2219_v1, %v3451_v18  ;;  %v2221_v13 = vpop.f32.mrb[31].mxu0 }
 0x608   : > { %v2243_v16 = vadd.f32 %v2235_v7, %v3459_v22  ;;  %v2237_v51 = vmul.f32 %v2221_v13, %v3451_v18  ;;  %v2518_v22 = vld [vmem:[%s3133_s29 + $0x70] sm:$0xff]  ;;  %s2535_s29 = sshll.u32 %s2958_s28, 12  ;;  %s2289_s28 = scalar_lea.sflag [#allocation4], %s3121_s13 }
 0x609   : > { %v2250_v23 = vmax.f32 %v2242_v11, 0.0  ;;  %v2244_v25 = vadd.f32 %v2236_v0, %v3465_v33  ;;  %v2267_v12 = vunpack.c.l.bf16 %v2518_v22  ;;  %v2268_v53 = vunpack.c.h.bf16 %v2518_v22  ;;  %s3645_s12 = scalar_lea.hbm %s3702_s7, %s2535_s29 }
 0x60a   : > { %v2251_v26 = vmax.f32 %v2243_v16, 0.0  ;;  %v2245_v28 = vadd.f32 %v2237_v51, %v3465_v33 }
 0x60b   : > { %v2271_v31 = vadd.f32 %v2263_v47, %v2250_v23  ;;  %v2252_v32 = vmax.f32 %v2244_v25, 0.0 }
 0x60c   : > { %v2272_v36 = vadd.f32 %v2264_v49, %v2251_v26  ;;  %v2253_v37 = vmax.f32 %v2245_v28, 0.0  ;;  %v2225_v39 = vpop.f32.mrb[32].mxu0 }
 0x60d   : > { %2520 = vst [vmem:[%s3477_s9 + $0xc0] sm:$0xff] %v2271_v31  ;;  %v2273_v18 = vadd.f32 %v2265_v21, %v2252_v32  ;;  %v2238_v40 = vmul.f32 %v2225_v39, %v3455_v20  ;;  %v2227_v41 = vpop.f32.mrb[33].mxu0 }
 0x60e   : > { %2521 = vst [vmem:[%s3477_s9 + $0xc8] sm:$0xff] %v2272_v36  ;;  %v2274_v42 = vadd.f32 %v2266_v30, %v2253_v37  ;;  %v2239_v43 = vmul.f32 %v2227_v41, %v3455_v20  ;;  %v2229_v33 = vpop.f32.mrb[34].mxu0 }
 0x60f   : > { %2522 = vst [vmem:[%s3477_s9 + $0xd0] sm:$0xff] %v2273_v18  ;;  %v2246_v8 = vadd.f32 %v2238_v40, %v3472_v44  ;;  %v2240_v15 = vmul.f32 %v2229_v33, %v3457_v24  ;;  %v2231_v45 = vpop.f32.mrb[35].mxu0 }
 0x610   : > { %2523 = vst [vmem:[%s3477_s9 + $0xd8] sm:$0xff] %v2274_v42  ;;  %v2247_v46 = vadd.f32 %v2239_v43, %v3472_v44  ;;  %v2241_v54 = vmul.f32 %v2231_v45, %v3457_v24 }
 0x611   : > { %v2254_v20 = vmax.f32 %v2246_v8, 0.0  ;;  %v2248_v27 = vadd.f32 %v2240_v15, %v3484_v48 }
 0x612   : > { %v2255_v17 = vmax.f32 %v2247_v46, 0.0  ;;  %v2249_v38 = vadd.f32 %v2241_v54, %v3484_v48 }
 0x613   : > { %v2275_v50 = vadd.f32 %v2267_v12, %v2254_v20  ;;  %v2256_v35 = vmax.f32 %v2248_v27, 0.0 }
 0x614   : > { %v2276_v44 = vadd.f32 %v2268_v53, %v2255_v17  ;;  %v2257_v52 = vmax.f32 %v2249_v38, 0.0 }
 0x615   : > { %2524 = vst [vmem:[%s3477_s9 + $0xe0] sm:$0xff] %v2275_v50  ;;  %v2277_v24 = vadd.f32 %v2269_v29, %v2256_v35 }
 0x616   : > { %2525 = vst [vmem:[%s3477_s9 + $0xe8] sm:$0xff] %v2276_v44  ;;  %v2278_v56 = vadd.f32 %v2270_v19, %v2257_v52 }
 0x617   : > { %2526 = vst [vmem:[%s3477_s9 + $0xf0] sm:$0xff] %v2277_v24 }
 0x618   : > { %2527 = vst [vmem:[%s3477_s9 + $0xf8] sm:$0xff] %v2278_v56 }
 0x619   : > { %2812 = shalt.err (!%p2809_p6)
}
 0x61a   : > { %s2813_s9 = scalar_lea.hbm %s3645_s12, 4096  ;;  %s2817_s21 = scalar_lea.hbm %s3702_s7, 8192 }
 0x61b   : > { %p2814_p8 = scmp.ne.s32.totalorder %s3645_s12, %s2813_s9  ;;  %p2818_p4 = scmp.lt.u32.totalorder %s3645_s12, %s3702_s7 }
 0x61c   : > { %p2819_p11 = scmp.lt.u32.totalorder %s2817_s21, %s2813_s9  ;;  %p2821_p3 = scmp.lt.u32.totalorder %s2813_s9, %s3645_s12 }
 0x61d   : > { %p2815_p10 = pnand %p2814_p8, %p3028_p12 }
 0x61e   : > { %p2820_p13 = por %p2819_p11, %p2818_p4 }
 0x61f   : > { %p2816_p0 = pneg %p2815_p10 }
 0x620   : > { %p2822_p7 = por %p2821_p3, %p2820_p13 }
 0x622   : > { %p2823_p9 = pnand %p2822_p7, %p2816_p0 }
 0x624   : > { %2826 = shalt.err (!%p2823_p9)
}
 0x625   : > { %s2896_s3 = smov 256  }
 0x626   : > { %2592 = dma.vmem_to_hbm [thread:$0]  (%p3028_p12), %s3648_s11, 4096, %s3645_s12, %s2289_s28, %s2896_s3, %s2896_s3, %s2885_s23  }
 0x627 PF: > { %s2317_s10 = sand.u32 1, %s2861_s24   ;;  %p3743_p2 = scmp.ne.s32.totalorder %s3713_s8, 0 }
 0x628   : > { %p3744_p5 = scmp.ge.s32.totalorder %s2873_s27, 2  ;;  %s2318_s29 = scalar_lea.sflag [#allocation4], %s2317_s10 }
 0x62a   : > { %p2606_p1 = pnand %p3744_p5, %p3743_p2 }
 0x62c   : > { %2856 = dma.done.wait (!%p2606_p1), %s2318_s29, 4096  }
 0x62d   : > { %2858 = vsyncadd (!%p2606_p1), %s2318_s29, 4294963200  ;;  %s3745_s27 = sld [smem:[#allocation14_spill]]  ;;  %s3746_s19 = sld [smem:[#allocation13_spill]] }
 0x62e   : > { %s3747_s26 = sld [smem:[#allocation15_spill]]  ;;  %s3748_s24 = smov %s2865_s25 }
 0x633   : > { %p23_p6 = scmp.ge.s32.totalorder %s3745_s27, 4   ;;  %s3749_s25 = smov %s3746_s19 }
 0x635   :  { %25 = sbr.rel (!%p23_p6) target bundleno = 10 (0xa), region = 131 }
 0x63c   :  { %2323 = vsyncpa [#allocation3], 1 }
 0x63d   :  { %2325 = vsyncpa [#allocation3 + $0x1], 1 }
 0x63e   :  { %2326 = vsyncpa [#allocation6], 1 }
 0x63f   :  { %2328 = vsyncpa [#allocation6 + $0x1], 1 }
 0x640   :  { %2329 = vsyncpa [#allocation4], 1 }
 0x641   :  { %2331 = vsyncpa [#allocation4 + $0x1], 1 }

</bundles_post_ra>
